<compile_context>
chip_gen: v5e
topology: v5e:2x2
jax: 0.10.0
libtpu: 0.0.40
codegen_flags: <defaults>
</compile_context>

<pallas_src>
import jax
import jax.numpy as jnp
from jax.experimental import pallas as pl
from jax.experimental.pallas import tpu as pltpu


def make_spectrum_lm_kernel(num_layers, dec_steps, hidden, out_dim):
    """Builds a Pallas kernel closed over static L / T / H / D."""
    L, T, H, D = num_layers, dec_steps, hidden, out_dim

    def kernel(x_ref, h0_ref, c0_ref,
               wih0_ref, b0_ref,
               win_ref, whh_ref, b_ref,
               wout_ref, bout_ref,
               frames_ref, hN_ref, cN_ref):
        B = x_ref.shape[0]

        # --- Hoist loop-invariant weight loads and pre-broadcast biases. ---
        W_in = [win_ref[l] for l in range(L)]       # (H, 4H); l==0 is W_out@W_ih0 (folded)
        W_hh = [whh_ref[l] for l in range(L)]       # (H, 4H)
        b_g = [jnp.broadcast_to(b_ref[l], (B, 4 * H)) for l in range(L)]  # l==0 is folded bias
        b0_b = jnp.broadcast_to(b0_ref[...], (B, 4 * H))
        w_out = wout_ref[...]                       # (H, D)
        b_out_b = jnp.broadcast_to(bout_ref[...], (B, D))

        # Initial state (static python loops -> fully unrolled).
        hs = [h0_ref[l] for l in range(L)]
        cs = [c0_ref[l] for l in range(L)]

        def lstm_cell(gates, c_prev):
            # One sigmoid + one tanh over the whole (B, 4H) register
            # (2 EUP pushes instead of 4), then lane-slice pre-activated gates.
            sig = jax.nn.sigmoid(gates)
            th = jnp.tanh(gates)
            i_g = sig[:, 0 * H:1 * H]
            f_g = sig[:, 1 * H:2 * H]
            g_g = th[:, 2 * H:3 * H]
            o_g = sig[:, 3 * H:4 * H]
            c_new = f_g * c_prev + i_g * g_g
            h_new = o_g * jnp.tanh(c_new)
            return h_new, c_new

        # t = 0 input-side contribution of layer 0 (computed exactly once).
        in0 = jnp.dot(x_ref[...], wih0_ref[...],
                      preferred_element_type=jnp.float32) + b0_b

        frames = []
        for t in range(T):                      # static unroll over decode steps
            # Layer 0: only the recurrent matmul sits on the serial chain.
            gates = in0 + jnp.dot(hs[0], W_hh[0],
                                  preferred_element_type=jnp.float32)
            hs[0], cs[0] = lstm_cell(gates, cs[0])
            inp = hs[0]
            for l in range(1, L):               # static unroll over LSTM layers
                # Two independent MXU pushes (pipeline) instead of a concat.
                gates = (jnp.dot(inp, W_in[l], preferred_element_type=jnp.float32)
                         + jnp.dot(hs[l], W_hh[l], preferred_element_type=jnp.float32)
                         + b_g[l])
                hs[l], cs[l] = lstm_cell(gates, cs[l])
                inp = hs[l]

            # Frame output: only feeds the frames buffer (off the recurrence).
            frames.append(jnp.dot(hs[L - 1], w_out,
                                  preferred_element_type=jnp.float32) + b_out_b)

            # Next step's layer-0 input contribution via the folded weight:
            #   (h_{L-1} @ W_out + b_out) @ W_ih0 + b0 == h_{L-1} @ W_fold + b_fold
            if t + 1 < T:
                in0 = jnp.dot(hs[L - 1], W_in[0],
                              preferred_element_type=jnp.float32) + b_g[0]

        # Single lane-dense (B, T*D) store instead of T masked partial stores.
        frames_ref[...] = jnp.concatenate(frames, axis=1)
        for l in range(L):
            hN_ref[l] = hs[l]
            cN_ref[l] = cs[l]

    return kernel


def spectrum_lm_forward(x, h0, c0, layer_params, w_out, b_out, dec_steps):
    """Runs the full autoregressive decode inside one pallas_call.

    Args:
      x:   (B, D) f32
      h0:  (L, B, H) f32
      c0:  (L, B, H) f32
      layer_params: list of (w_ih_T (in_dim,4H), w_hh_T (H,4H), bias (1,4H))
                    bias = b_ih + b_hh (PyTorch convention); in_dim = D for
                    layer 0 and H otherwise.
      w_out: (H, D) f32,  b_out: (1, D) f32
    Returns:
      frames (B, dec_steps, D), (hN, cN) each (L, B, H)
    """
    B, D = x.shape
    L = len(layer_params)
    H = h0.shape[-1]

    w_ih0, _, b0 = layer_params[0]                 # (D,4H), -, (1,4H)

    # Fold out_fc into layer-0's input path (for t >= 1): feeding
    # ht = h_{L-1} @ W_out + b_out into W_ih0 equals applying
    # W_fold = W_out @ W_ih0 and b_fold = b0 + b_out @ W_ih0 directly to h_{L-1}.
    w_fold = w_out @ w_ih0                         # (H, 4H)
    b_fold = b0 + b_out @ w_ih0                    # (1, 4H)

    # Stack per-layer operands -> fixed operand count (10) regardless of L.
    w_in_stack = jnp.stack([w_fold] + [p[0] for p in layer_params[1:]])   # (L, H, 4H)
    w_hh_stack = jnp.stack([p[1] for p in layer_params])                  # (L, H, 4H)
    b_stack = jnp.stack([b_fold] + [p[2] for p in layer_params[1:]])      # (L, 1, 4H)

    kernel = make_spectrum_lm_kernel(L, dec_steps, H, D)
    vmem = pl.BlockSpec(memory_space=pltpu.MemorySpace.VMEM)

    frames_flat, hN, cN = pl.pallas_call(
        kernel,
        out_shape=(
            jax.ShapeDtypeStruct((B, dec_steps * D), jnp.float32),
            jax.ShapeDtypeStruct((L, B, H), jnp.float32),
            jax.ShapeDtypeStruct((L, B, H), jnp.float32),
        ),
        in_specs=[vmem] * 10,
        out_specs=(vmem, vmem, vmem),
    )(x, h0, c0, w_ih0, b0, w_in_stack, w_hh_stack, b_stack, w_out, b_out)

    # Contiguous reshape only (no transpose / extra HBM pass): (B, T*D)->(B, T, D).
    frames = frames_flat.reshape(B, dec_steps, D)
    return frames, (hN, cN)


def spectrum_lm_reference(x, h0, c0, layer_params, w_out, b_out, dec_steps):
    """Pure-JAX reference (mirrors the PyTorch forward, eval mode)."""
    L = len(layer_params)
    H = h0.shape[-1]
    hs = [h0[l] for l in range(L)]
    cs = [c0[l] for l in range(L)]
    ht = x
    frames = []
    for _ in range(dec_steps):
        inp = ht
        for l, (wih, whh, b) in enumerate(layer_params):
            gates = inp @ wih + hs[l] @ whh + b
            i_g = jax.nn.sigmoid(gates[:, 0 * H:1 * H])
            f_g = jax.nn.sigmoid(gates[:, 1 * H:2 * H])
            g_g = jnp.tanh(gates[:, 2 * H:3 * H])
            o_g = jax.nn.sigmoid(gates[:, 3 * H:4 * H])
            cs[l] = f_g * cs[l] + i_g * g_g
            hs[l] = o_g * jnp.tanh(cs[l])
            inp = hs[l]
        ht = inp @ w_out + b_out
        frames.append(ht)
    return jnp.stack(frames, axis=1), (jnp.stack(hs), jnp.stack(cs))


if __name__ == "__main__":
    # Small shapes consistent with the module's forward.
    B = 4          # batch
    D = 16         # out_dim (spectrum frame size == LSTM input size)
    H = 32         # rnn_size
    L = 2          # rnn_layers
    T = 8          # dec_steps

    key = jax.random.PRNGKey(0)
    keys = jax.random.split(key, 4 + 4 * L)

    # Deterministic "module" parameters (PyTorch-style uniform(-1/sqrt(H), 1/sqrt(H))).
    scale = 1.0 / jnp.sqrt(jnp.float32(H))
    layer_params = []
    for l in range(L):
        in_dim = D if l == 0 else H
        w_ih = jax.random.uniform(keys[4 * l + 0], (in_dim, 4 * H),
                                  minval=-scale, maxval=scale, dtype=jnp.float32)
        w_hh = jax.random.uniform(keys[4 * l + 1], (H, 4 * H),
                                  minval=-scale, maxval=scale, dtype=jnp.float32)
        b_ih = jax.random.uniform(keys[4 * l + 2], (1, 4 * H),
                                  minval=-scale, maxval=scale, dtype=jnp.float32)
        b_hh = jax.random.uniform(keys[4 * l + 3], (1, 4 * H),
                                  minval=-scale, maxval=scale, dtype=jnp.float32)
        layer_params.append((w_ih, w_hh, b_ih + b_hh))

    w_out = jax.random.uniform(keys[4 * L + 0], (H, D),
                               minval=-scale, maxval=scale, dtype=jnp.float32)
    b_out = jax.random.uniform(keys[4 * L + 1], (1, D),
                               minval=-scale, maxval=scale, dtype=jnp.float32)

    # Inputs: x (B, D); state == init_hidden (randn h0, c0 = h0.clone()).
    x = jax.random.normal(keys[4 * L + 2], (B, D), dtype=jnp.float32)
    h0 = jax.random.normal(keys[4 * L + 3], (L, B, H), dtype=jnp.float32)
    c0 = h0  # .clone() in PyTorch

    frames, (hN, cN) = spectrum_lm_forward(x, h0, c0, layer_params,
                                           w_out, b_out, T)
    jax.block_until_ready(frames)

    frames_ref, (hN_ref, cN_ref) = spectrum_lm_reference(
        x, h0, c0, layer_params, w_out, b_out, T)

    assert frames.shape == (B, T, D), frames.shape
    assert hN.shape == (L, B, H) and cN.shape == (L, B, H)
    # Slightly relaxed tolerance: folding W_out into layer-0's input weight
    # changes f32 accumulation order (expected ~1e-6-level deltas).
    assert jnp.allclose(frames, frames_ref, atol=3e-5, rtol=3e-5)
    assert jnp.allclose(hN, hN_ref, atol=3e-5, rtol=3e-5)
    assert jnp.allclose(cN, cN_ref, atol=3e-5, rtol=3e-5)

    print("KERNEL_OK")
</pallas_src>

<mosaic_0001>
module attributes {stable_mosaic.version = 11 : i64} {
  func.func @kernel(%arg0: memref<4x16xf32, #tpu.memory_space<vmem>>, %arg1: memref<2x4x32xf32, #tpu.memory_space<vmem>>, %arg2: memref<2x4x32xf32, #tpu.memory_space<vmem>>, %arg3: memref<16x128xf32, #tpu.memory_space<vmem>>, %arg4: memref<1x128xf32, #tpu.memory_space<vmem>>, %arg5: memref<2x32x128xf32, #tpu.memory_space<vmem>>, %arg6: memref<2x32x128xf32, #tpu.memory_space<vmem>>, %arg7: memref<2x1x128xf32, #tpu.memory_space<vmem>>, %arg8: memref<32x16xf32, #tpu.memory_space<vmem>>, %arg9: memref<1x16xf32, #tpu.memory_space<vmem>>, %arg10: memref<4x128xf32, #tpu.memory_space<vmem>>, %arg11: memref<2x4x32xf32, #tpu.memory_space<vmem>>, %arg12: memref<2x4x32xf32, #tpu.memory_space<vmem>>) attributes {dimension_semantics = [], scalar_prefetch = 0 : i64, scratch_operands = 0 : i64, tpu.core_type = #tpu.core_type<tc>} {
    %c0 = arith.constant 0 : index
    %c0_0 = arith.constant 0 : index
    %c0_1 = arith.constant 0 : index
    %0 = vector.load %arg5[%c0, %c0_0, %c0_1] : memref<2x32x128xf32, #tpu.memory_space<vmem>>, vector<1x32x128xf32>
    %1 = vector.shape_cast %0 : vector<1x32x128xf32> to vector<32x128xf32>
    %c1 = arith.constant 1 : index
    %c0_2 = arith.constant 0 : index
    %c0_3 = arith.constant 0 : index
    %2 = vector.load %arg5[%c1, %c0_2, %c0_3] : memref<2x32x128xf32, #tpu.memory_space<vmem>>, vector<1x32x128xf32>
    %3 = vector.shape_cast %2 : vector<1x32x128xf32> to vector<32x128xf32>
    %c0_4 = arith.constant 0 : index
    %c0_5 = arith.constant 0 : index
    %c0_6 = arith.constant 0 : index
    %4 = vector.load %arg6[%c0_4, %c0_5, %c0_6] : memref<2x32x128xf32, #tpu.memory_space<vmem>>, vector<1x32x128xf32>
    %5 = vector.shape_cast %4 : vector<1x32x128xf32> to vector<32x128xf32>
    %c1_7 = arith.constant 1 : index
    %c0_8 = arith.constant 0 : index
    %c0_9 = arith.constant 0 : index
    %6 = vector.load %arg6[%c1_7, %c0_8, %c0_9] : memref<2x32x128xf32, #tpu.memory_space<vmem>>, vector<1x32x128xf32>
    %7 = vector.shape_cast %6 : vector<1x32x128xf32> to vector<32x128xf32>
    %c0_10 = arith.constant 0 : index
    %c0_11 = arith.constant 0 : index
    %c0_12 = arith.constant 0 : index
    %8 = vector.load %arg7[%c0_10, %c0_11, %c0_12] : memref<2x1x128xf32, #tpu.memory_space<vmem>>, vector<1x1x128xf32>
    %9 = vector.shape_cast %8 : vector<1x1x128xf32> to vector<1x128xf32>
    %10 = vector.shape_cast %9 : vector<1x128xf32> to vector<1x128xf32>
    %11 = vector.broadcast %10 : vector<1x128xf32> to vector<4x128xf32>
    %c1_13 = arith.constant 1 : index
    %c0_14 = arith.constant 0 : index
    %c0_15 = arith.constant 0 : index
    %12 = vector.load %arg7[%c1_13, %c0_14, %c0_15] : memref<2x1x128xf32, #tpu.memory_space<vmem>>, vector<1x1x128xf32>
    %13 = vector.shape_cast %12 : vector<1x1x128xf32> to vector<1x128xf32>
    %14 = vector.shape_cast %13 : vector<1x128xf32> to vector<1x128xf32>
    %15 = vector.broadcast %14 : vector<1x128xf32> to vector<4x128xf32>
    %c0_16 = arith.constant 0 : index
    %c0_17 = arith.constant 0 : index
    %16 = vector.load %arg4[%c0_16, %c0_17] : memref<1x128xf32, #tpu.memory_space<vmem>>, vector<1x128xf32>
    %17 = vector.shape_cast %16 : vector<1x128xf32> to vector<1x128xf32>
    %18 = vector.broadcast %17 : vector<1x128xf32> to vector<4x128xf32>
    %c0_18 = arith.constant 0 : index
    %c0_19 = arith.constant 0 : index
    %19 = vector.load %arg8[%c0_18, %c0_19] : memref<32x16xf32, #tpu.memory_space<vmem>>, vector<32x16xf32>
    %c0_20 = arith.constant 0 : index
    %c0_21 = arith.constant 0 : index
    %20 = vector.load %arg9[%c0_20, %c0_21] : memref<1x16xf32, #tpu.memory_space<vmem>>, vector<1x16xf32>
    %21 = vector.shape_cast %20 : vector<1x16xf32> to vector<1x16xf32>
    %22 = vector.broadcast %21 : vector<1x16xf32> to vector<4x16xf32>
    %c0_22 = arith.constant 0 : index
    %c0_23 = arith.constant 0 : index
    %c0_24 = arith.constant 0 : index
    %23 = vector.load %arg1[%c0_22, %c0_23, %c0_24] : memref<2x4x32xf32, #tpu.memory_space<vmem>>, vector<1x4x32xf32>
    %24 = vector.shape_cast %23 : vector<1x4x32xf32> to vector<4x32xf32>
    %c1_25 = arith.constant 1 : index
    %c0_26 = arith.constant 0 : index
    %c0_27 = arith.constant 0 : index
    %25 = vector.load %arg1[%c1_25, %c0_26, %c0_27] : memref<2x4x32xf32, #tpu.memory_space<vmem>>, vector<1x4x32xf32>
    %26 = vector.shape_cast %25 : vector<1x4x32xf32> to vector<4x32xf32>
    %c0_28 = arith.constant 0 : index
    %c0_29 = arith.constant 0 : index
    %c0_30 = arith.constant 0 : index
    %27 = vector.load %arg2[%c0_28, %c0_29, %c0_30] : memref<2x4x32xf32, #tpu.memory_space<vmem>>, vector<1x4x32xf32>
    %28 = vector.shape_cast %27 : vector<1x4x32xf32> to vector<4x32xf32>
    %c1_31 = arith.constant 1 : index
    %c0_32 = arith.constant 0 : index
    %c0_33 = arith.constant 0 : index
    %29 = vector.load %arg2[%c1_31, %c0_32, %c0_33] : memref<2x4x32xf32, #tpu.memory_space<vmem>>, vector<1x4x32xf32>
    %30 = vector.shape_cast %29 : vector<1x4x32xf32> to vector<4x32xf32>
    %c0_34 = arith.constant 0 : index
    %c0_35 = arith.constant 0 : index
    %31 = vector.load %arg0[%c0_34, %c0_35] : memref<4x16xf32, #tpu.memory_space<vmem>>, vector<4x16xf32>
    %c0_36 = arith.constant 0 : index
    %c0_37 = arith.constant 0 : index
    %32 = vector.load %arg3[%c0_36, %c0_37] : memref<16x128xf32, #tpu.memory_space<vmem>>, vector<16x128xf32>
    %cst = arith.constant dense<0.000000e+00> : vector<4x128xf32>
    %33 = tpu.matmul %31, %32, %cst {dimension_numbers = #tpu.dot_dimension_numbers<[1], [0], [0], [1], [0, 0, 1, 1], [], []>} : vector<4x16xf32>, vector<16x128xf32>, vector<4x128xf32> -> vector<4x128xf32>
    %34 = arith.addf %33, %18 : vector<4x128xf32>
    %cst_38 = arith.constant dense<0.000000e+00> : vector<4x128xf32>
    %35 = tpu.matmul %24, %5, %cst_38 {dimension_numbers = #tpu.dot_dimension_numbers<[1], [0], [0], [1], [0, 0, 1, 1], [], []>} : vector<4x32xf32>, vector<32x128xf32>, vector<4x128xf32> -> vector<4x128xf32>
    %36 = arith.addf %34, %35 : vector<4x128xf32>
    %37 = arith.negf %36 : vector<4x128xf32>
    %38 = math.exp %37 : vector<4x128xf32>
    %cst_39 = arith.constant 1.000000e+00 : f32
    %39 = vector.broadcast %cst_39 : f32 to vector<4x128xf32>
    %40 = arith.addf %39, %38 : vector<4x128xf32>
    %41 = arith.divf %39, %40 : vector<4x128xf32>
    %42 = math.tanh %36 : vector<4x128xf32>
    %43 = vector.extract_strided_slice %41 {offsets = [0, 0], sizes = [4, 32], strides = [1, 1]} : vector<4x128xf32> to vector<4x32xf32>
    %44 = vector.extract_strided_slice %41 {offsets = [0, 32], sizes = [4, 32], strides = [1, 1]} : vector<4x128xf32> to vector<4x32xf32>
    %45 = vector.extract_strided_slice %42 {offsets = [0, 64], sizes = [4, 32], strides = [1, 1]} : vector<4x128xf32> to vector<4x32xf32>
    %46 = vector.extract_strided_slice %41 {offsets = [0, 96], sizes = [4, 32], strides = [1, 1]} : vector<4x128xf32> to vector<4x32xf32>
    %47 = arith.mulf %44, %28 : vector<4x32xf32>
    %48 = arith.mulf %43, %45 : vector<4x32xf32>
    %49 = arith.addf %47, %48 : vector<4x32xf32>
    %50 = math.tanh %49 : vector<4x32xf32>
    %51 = arith.mulf %46, %50 : vector<4x32xf32>
    %cst_40 = arith.constant dense<0.000000e+00> : vector<4x128xf32>
    %52 = tpu.matmul %51, %3, %cst_40 {dimension_numbers = #tpu.dot_dimension_numbers<[1], [0], [0], [1], [0, 0, 1, 1], [], []>} : vector<4x32xf32>, vector<32x128xf32>, vector<4x128xf32> -> vector<4x128xf32>
    %cst_41 = arith.constant dense<0.000000e+00> : vector<4x128xf32>
    %53 = tpu.matmul %26, %7, %cst_41 {dimension_numbers = #tpu.dot_dimension_numbers<[1], [0], [0], [1], [0, 0, 1, 1], [], []>} : vector<4x32xf32>, vector<32x128xf32>, vector<4x128xf32> -> vector<4x128xf32>
    %54 = arith.addf %52, %53 : vector<4x128xf32>
    %55 = arith.addf %54, %15 : vector<4x128xf32>
    %56 = arith.negf %55 : vector<4x128xf32>
    %57 = math.exp %56 : vector<4x128xf32>
    %cst_42 = arith.constant 1.000000e+00 : f32
    %58 = vector.broadcast %cst_42 : f32 to vector<4x128xf32>
    %59 = arith.addf %58, %57 : vector<4x128xf32>
    %60 = arith.divf %58, %59 : vector<4x128xf32>
    %61 = math.tanh %55 : vector<4x128xf32>
    %62 = vector.extract_strided_slice %60 {offsets = [0, 0], sizes = [4, 32], strides = [1, 1]} : vector<4x128xf32> to vector<4x32xf32>
    %63 = vector.extract_strided_slice %60 {offsets = [0, 32], sizes = [4, 32], strides = [1, 1]} : vector<4x128xf32> to vector<4x32xf32>
    %64 = vector.extract_strided_slice %61 {offsets = [0, 64], sizes = [4, 32], strides = [1, 1]} : vector<4x128xf32> to vector<4x32xf32>
    %65 = vector.extract_strided_slice %60 {offsets = [0, 96], sizes = [4, 32], strides = [1, 1]} : vector<4x128xf32> to vector<4x32xf32>
    %66 = arith.mulf %63, %30 : vector<4x32xf32>
    %67 = arith.mulf %62, %64 : vector<4x32xf32>
    %68 = arith.addf %66, %67 : vector<4x32xf32>
    %69 = math.tanh %68 : vector<4x32xf32>
    %70 = arith.mulf %65, %69 : vector<4x32xf32>
    %cst_43 = arith.constant dense<0.000000e+00> : vector<4x16xf32>
    %71 = tpu.matmul %70, %19, %cst_43 {dimension_numbers = #tpu.dot_dimension_numbers<[1], [0], [0], [1], [0, 0, 1, 1], [], []>} : vector<4x32xf32>, vector<32x16xf32>, vector<4x16xf32> -> vector<4x16xf32>
    %72 = arith.addf %71, %22 : vector<4x16xf32>
    %cst_44 = arith.constant dense<0.000000e+00> : vector<4x128xf32>
    %73 = tpu.matmul %70, %1, %cst_44 {dimension_numbers = #tpu.dot_dimension_numbers<[1], [0], [0], [1], [0, 0, 1, 1], [], []>} : vector<4x32xf32>, vector<32x128xf32>, vector<4x128xf32> -> vector<4x128xf32>
    %74 = arith.addf %73, %11 : vector<4x128xf32>
    %cst_45 = arith.constant dense<0.000000e+00> : vector<4x128xf32>
    %75 = tpu.matmul %51, %5, %cst_45 {dimension_numbers = #tpu.dot_dimension_numbers<[1], [0], [0], [1], [0, 0, 1, 1], [], []>} : vector<4x32xf32>, vector<32x128xf32>, vector<4x128xf32> -> vector<4x128xf32>
    %76 = arith.addf %74, %75 : vector<4x128xf32>
    %77 = arith.negf %76 : vector<4x128xf32>
    %78 = math.exp %77 : vector<4x128xf32>
    %cst_46 = arith.constant 1.000000e+00 : f32
    %79 = vector.broadcast %cst_46 : f32 to vector<4x128xf32>
    %80 = arith.addf %79, %78 : vector<4x128xf32>
    %81 = arith.divf %79, %80 : vector<4x128xf32>
    %82 = math.tanh %76 : vector<4x128xf32>
    %83 = vector.extract_strided_slice %81 {offsets = [0, 0], sizes = [4, 32], strides = [1, 1]} : vector<4x128xf32> to vector<4x32xf32>
    %84 = vector.extract_strided_slice %81 {offsets = [0, 32], sizes = [4, 32], strides = [1, 1]} : vector<4x128xf32> to vector<4x32xf32>
    %85 = vector.extract_strided_slice %82 {offsets = [0, 64], sizes = [4, 32], strides = [1, 1]} : vector<4x128xf32> to vector<4x32xf32>
    %86 = vector.extract_strided_slice %81 {offsets = [0, 96], sizes = [4, 32], strides = [1, 1]} : vector<4x128xf32> to vector<4x32xf32>
    %87 = arith.mulf %84, %49 : vector<4x32xf32>
    %88 = arith.mulf %83, %85 : vector<4x32xf32>
    %89 = arith.addf %87, %88 : vector<4x32xf32>
    %90 = math.tanh %89 : vector<4x32xf32>
    %91 = arith.mulf %86, %90 : vector<4x32xf32>
    %cst_47 = arith.constant dense<0.000000e+00> : vector<4x128xf32>
    %92 = tpu.matmul %91, %3, %cst_47 {dimension_numbers = #tpu.dot_dimension_numbers<[1], [0], [0], [1], [0, 0, 1, 1], [], []>} : vector<4x32xf32>, vector<32x128xf32>, vector<4x128xf32> -> vector<4x128xf32>
    %cst_48 = arith.constant dense<0.000000e+00> : vector<4x128xf32>
    %93 = tpu.matmul %70, %7, %cst_48 {dimension_numbers = #tpu.dot_dimension_numbers<[1], [0], [0], [1], [0, 0, 1, 1], [], []>} : vector<4x32xf32>, vector<32x128xf32>, vector<4x128xf32> -> vector<4x128xf32>
    %94 = arith.addf %92, %93 : vector<4x128xf32>
    %95 = arith.addf %94, %15 : vector<4x128xf32>
    %96 = arith.negf %95 : vector<4x128xf32>
    %97 = math.exp %96 : vector<4x128xf32>
    %cst_49 = arith.constant 1.000000e+00 : f32
    %98 = vector.broadcast %cst_49 : f32 to vector<4x128xf32>
    %99 = arith.addf %98, %97 : vector<4x128xf32>
    %100 = arith.divf %98, %99 : vector<4x128xf32>
    %101 = math.tanh %95 : vector<4x128xf32>
    %102 = vector.extract_strided_slice %100 {offsets = [0, 0], sizes = [4, 32], strides = [1, 1]} : vector<4x128xf32> to vector<4x32xf32>
    %103 = vector.extract_strided_slice %100 {offsets = [0, 32], sizes = [4, 32], strides = [1, 1]} : vector<4x128xf32> to vector<4x32xf32>
    %104 = vector.extract_strided_slice %101 {offsets = [0, 64], sizes = [4, 32], strides = [1, 1]} : vector<4x128xf32> to vector<4x32xf32>
    %105 = vector.extract_strided_slice %100 {offsets = [0, 96], sizes = [4, 32], strides = [1, 1]} : vector<4x128xf32> to vector<4x32xf32>
    %106 = arith.mulf %103, %68 : vector<4x32xf32>
    %107 = arith.mulf %102, %104 : vector<4x32xf32>
    %108 = arith.addf %106, %107 : vector<4x32xf32>
    %109 = math.tanh %108 : vector<4x32xf32>
    %110 = arith.mulf %105, %109 : vector<4x32xf32>
    %cst_50 = arith.constant dense<0.000000e+00> : vector<4x16xf32>
    %111 = tpu.matmul %110, %19, %cst_50 {dimension_numbers = #tpu.dot_dimension_numbers<[1], [0], [0], [1], [0, 0, 1, 1], [], []>} : vector<4x32xf32>, vector<32x16xf32>, vector<4x16xf32> -> vector<4x16xf32>
    %112 = arith.addf %111, %22 : vector<4x16xf32>
    %cst_51 = arith.constant dense<0.000000e+00> : vector<4x128xf32>
    %113 = tpu.matmul %110, %1, %cst_51 {dimension_numbers = #tpu.dot_dimension_numbers<[1], [0], [0], [1], [0, 0, 1, 1], [], []>} : vector<4x32xf32>, vector<32x128xf32>, vector<4x128xf32> -> vector<4x128xf32>
    %114 = arith.addf %113, %11 : vector<4x128xf32>
    %cst_52 = arith.constant dense<0.000000e+00> : vector<4x128xf32>
    %115 = tpu.matmul %91, %5, %cst_52 {dimension_numbers = #tpu.dot_dimension_numbers<[1], [0], [0], [1], [0, 0, 1, 1], [], []>} : vector<4x32xf32>, vector<32x128xf32>, vector<4x128xf32> -> vector<4x128xf32>
    %116 = arith.addf %114, %115 : vector<4x128xf32>
    %117 = arith.negf %116 : vector<4x128xf32>
    %118 = math.exp %117 : vector<4x128xf32>
    %cst_53 = arith.constant 1.000000e+00 : f32
    %119 = vector.broadcast %cst_53 : f32 to vector<4x128xf32>
    %120 = arith.addf %119, %118 : vector<4x128xf32>
    %121 = arith.divf %119, %120 : vector<4x128xf32>
    %122 = math.tanh %116 : vector<4x128xf32>
    %123 = vector.extract_strided_slice %121 {offsets = [0, 0], sizes = [4, 32], strides = [1, 1]} : vector<4x128xf32> to vector<4x32xf32>
    %124 = vector.extract_strided_slice %121 {offsets = [0, 32], sizes = [4, 32], strides = [1, 1]} : vector<4x128xf32> to vector<4x32xf32>
    %125 = vector.extract_strided_slice %122 {offsets = [0, 64], sizes = [4, 32], strides = [1, 1]} : vector<4x128xf32> to vector<4x32xf32>
    %126 = vector.extract_strided_slice %121 {offsets = [0, 96], sizes = [4, 32], strides = [1, 1]} : vector<4x128xf32> to vector<4x32xf32>
    %127 = arith.mulf %124, %89 : vector<4x32xf32>
    %128 = arith.mulf %123, %125 : vector<4x32xf32>
    %129 = arith.addf %127, %128 : vector<4x32xf32>
    %130 = math.tanh %129 : vector<4x32xf32>
    %131 = arith.mulf %126, %130 : vector<4x32xf32>
    %cst_54 = arith.constant dense<0.000000e+00> : vector<4x128xf32>
    %132 = tpu.matmul %131, %3, %cst_54 {dimension_numbers = #tpu.dot_dimension_numbers<[1], [0], [0], [1], [0, 0, 1, 1], [], []>} : vector<4x32xf32>, vector<32x128xf32>, vector<4x128xf32> -> vector<4x128xf32>
    %cst_55 = arith.constant dense<0.000000e+00> : vector<4x128xf32>
    %133 = tpu.matmul %110, %7, %cst_55 {dimension_numbers = #tpu.dot_dimension_numbers<[1], [0], [0], [1], [0, 0, 1, 1], [], []>} : vector<4x32xf32>, vector<32x128xf32>, vector<4x128xf32> -> vector<4x128xf32>
    %134 = arith.addf %132, %133 : vector<4x128xf32>
    %135 = arith.addf %134, %15 : vector<4x128xf32>
    %136 = arith.negf %135 : vector<4x128xf32>
    %137 = math.exp %136 : vector<4x128xf32>
    %cst_56 = arith.constant 1.000000e+00 : f32
    %138 = vector.broadcast %cst_56 : f32 to vector<4x128xf32>
    %139 = arith.addf %138, %137 : vector<4x128xf32>
    %140 = arith.divf %138, %139 : vector<4x128xf32>
    %141 = math.tanh %135 : vector<4x128xf32>
    %142 = vector.extract_strided_slice %140 {offsets = [0, 0], sizes = [4, 32], strides = [1, 1]} : vector<4x128xf32> to vector<4x32xf32>
    %143 = vector.extract_strided_slice %140 {offsets = [0, 32], sizes = [4, 32], strides = [1, 1]} : vector<4x128xf32> to vector<4x32xf32>
    %144 = vector.extract_strided_slice %141 {offsets = [0, 64], sizes = [4, 32], strides = [1, 1]} : vector<4x128xf32> to vector<4x32xf32>
    %145 = vector.extract_strided_slice %140 {offsets = [0, 96], sizes = [4, 32], strides = [1, 1]} : vector<4x128xf32> to vector<4x32xf32>
    %146 = arith.mulf %143, %108 : vector<4x32xf32>
    %147 = arith.mulf %142, %144 : vector<4x32xf32>
    %148 = arith.addf %146, %147 : vector<4x32xf32>
    %149 = math.tanh %148 : vector<4x32xf32>
    %150 = arith.mulf %145, %149 : vector<4x32xf32>
    %cst_57 = arith.constant dense<0.000000e+00> : vector<4x16xf32>
    %151 = tpu.matmul %150, %19, %cst_57 {dimension_numbers = #tpu.dot_dimension_numbers<[1], [0], [0], [1], [0, 0, 1, 1], [], []>} : vector<4x32xf32>, vector<32x16xf32>, vector<4x16xf32> -> vector<4x16xf32>
    %152 = arith.addf %151, %22 : vector<4x16xf32>
    %cst_58 = arith.constant dense<0.000000e+00> : vector<4x128xf32>
    %153 = tpu.matmul %150, %1, %cst_58 {dimension_numbers = #tpu.dot_dimension_numbers<[1], [0], [0], [1], [0, 0, 1, 1], [], []>} : vector<4x32xf32>, vector<32x128xf32>, vector<4x128xf32> -> vector<4x128xf32>
    %154 = arith.addf %153, %11 : vector<4x128xf32>
    %cst_59 = arith.constant dense<0.000000e+00> : vector<4x128xf32>
    %155 = tpu.matmul %131, %5, %cst_59 {dimension_numbers = #tpu.dot_dimension_numbers<[1], [0], [0], [1], [0, 0, 1, 1], [], []>} : vector<4x32xf32>, vector<32x128xf32>, vector<4x128xf32> -> vector<4x128xf32>
    %156 = arith.addf %154, %155 : vector<4x128xf32>
    %157 = arith.negf %156 : vector<4x128xf32>
    %158 = math.exp %157 : vector<4x128xf32>
    %cst_60 = arith.constant 1.000000e+00 : f32
    %159 = vector.broadcast %cst_60 : f32 to vector<4x128xf32>
    %160 = arith.addf %159, %158 : vector<4x128xf32>
    %161 = arith.divf %159, %160 : vector<4x128xf32>
    %162 = math.tanh %156 : vector<4x128xf32>
    %163 = vector.extract_strided_slice %161 {offsets = [0, 0], sizes = [4, 32], strides = [1, 1]} : vector<4x128xf32> to vector<4x32xf32>
    %164 = vector.extract_strided_slice %161 {offsets = [0, 32], sizes = [4, 32], strides = [1, 1]} : vector<4x128xf32> to vector<4x32xf32>
    %165 = vector.extract_strided_slice %162 {offsets = [0, 64], sizes = [4, 32], strides = [1, 1]} : vector<4x128xf32> to vector<4x32xf32>
    %166 = vector.extract_strided_slice %161 {offsets = [0, 96], sizes = [4, 32], strides = [1, 1]} : vector<4x128xf32> to vector<4x32xf32>
    %167 = arith.mulf %164, %129 : vector<4x32xf32>
    %168 = arith.mulf %163, %165 : vector<4x32xf32>
    %169 = arith.addf %167, %168 : vector<4x32xf32>
    %170 = math.tanh %169 : vector<4x32xf32>
    %171 = arith.mulf %166, %170 : vector<4x32xf32>
    %cst_61 = arith.constant dense<0.000000e+00> : vector<4x128xf32>
    %172 = tpu.matmul %171, %3, %cst_61 {dimension_numbers = #tpu.dot_dimension_numbers<[1], [0], [0], [1], [0, 0, 1, 1], [], []>} : vector<4x32xf32>, vector<32x128xf32>, vector<4x128xf32> -> vector<4x128xf32>
    %cst_62 = arith.constant dense<0.000000e+00> : vector<4x128xf32>
    %173 = tpu.matmul %150, %7, %cst_62 {dimension_numbers = #tpu.dot_dimension_numbers<[1], [0], [0], [1], [0, 0, 1, 1], [], []>} : vector<4x32xf32>, vector<32x128xf32>, vector<4x128xf32> -> vector<4x128xf32>
    %174 = arith.addf %172, %173 : vector<4x128xf32>
    %175 = arith.addf %174, %15 : vector<4x128xf32>
    %176 = arith.negf %175 : vector<4x128xf32>
    %177 = math.exp %176 : vector<4x128xf32>
    %cst_63 = arith.constant 1.000000e+00 : f32
    %178 = vector.broadcast %cst_63 : f32 to vector<4x128xf32>
    %179 = arith.addf %178, %177 : vector<4x128xf32>
    %180 = arith.divf %178, %179 : vector<4x128xf32>
    %181 = math.tanh %175 : vector<4x128xf32>
    %182 = vector.extract_strided_slice %180 {offsets = [0, 0], sizes = [4, 32], strides = [1, 1]} : vector<4x128xf32> to vector<4x32xf32>
    %183 = vector.extract_strided_slice %180 {offsets = [0, 32], sizes = [4, 32], strides = [1, 1]} : vector<4x128xf32> to vector<4x32xf32>
    %184 = vector.extract_strided_slice %181 {offsets = [0, 64], sizes = [4, 32], strides = [1, 1]} : vector<4x128xf32> to vector<4x32xf32>
    %185 = vector.extract_strided_slice %180 {offsets = [0, 96], sizes = [4, 32], strides = [1, 1]} : vector<4x128xf32> to vector<4x32xf32>
    %186 = arith.mulf %183, %148 : vector<4x32xf32>
    %187 = arith.mulf %182, %184 : vector<4x32xf32>
    %188 = arith.addf %186, %187 : vector<4x32xf32>
    %189 = math.tanh %188 : vector<4x32xf32>
    %190 = arith.mulf %185, %189 : vector<4x32xf32>
    %cst_64 = arith.constant dense<0.000000e+00> : vector<4x16xf32>
    %191 = tpu.matmul %190, %19, %cst_64 {dimension_numbers = #tpu.dot_dimension_numbers<[1], [0], [0], [1], [0, 0, 1, 1], [], []>} : vector<4x32xf32>, vector<32x16xf32>, vector<4x16xf32> -> vector<4x16xf32>
    %192 = arith.addf %191, %22 : vector<4x16xf32>
    %cst_65 = arith.constant dense<0.000000e+00> : vector<4x128xf32>
    %193 = tpu.matmul %190, %1, %cst_65 {dimension_numbers = #tpu.dot_dimension_numbers<[1], [0], [0], [1], [0, 0, 1, 1], [], []>} : vector<4x32xf32>, vector<32x128xf32>, vector<4x128xf32> -> vector<4x128xf32>
    %194 = arith.addf %193, %11 : vector<4x128xf32>
    %cst_66 = arith.constant dense<0.000000e+00> : vector<4x128xf32>
    %195 = tpu.matmul %171, %5, %cst_66 {dimension_numbers = #tpu.dot_dimension_numbers<[1], [0], [0], [1], [0, 0, 1, 1], [], []>} : vector<4x32xf32>, vector<32x128xf32>, vector<4x128xf32> -> vector<4x128xf32>
    %196 = arith.addf %194, %195 : vector<4x128xf32>
    %197 = arith.negf %196 : vector<4x128xf32>
    %198 = math.exp %197 : vector<4x128xf32>
    %cst_67 = arith.constant 1.000000e+00 : f32
    %199 = vector.broadcast %cst_67 : f32 to vector<4x128xf32>
    %200 = arith.addf %199, %198 : vector<4x128xf32>
    %201 = arith.divf %199, %200 : vector<4x128xf32>
    %202 = math.tanh %196 : vector<4x128xf32>
    %203 = vector.extract_strided_slice %201 {offsets = [0, 0], sizes = [4, 32], strides = [1, 1]} : vector<4x128xf32> to vector<4x32xf32>
    %204 = vector.extract_strided_slice %201 {offsets = [0, 32], sizes = [4, 32], strides = [1, 1]} : vector<4x128xf32> to vector<4x32xf32>
    %205 = vector.extract_strided_slice %202 {offsets = [0, 64], sizes = [4, 32], strides = [1, 1]} : vector<4x128xf32> to vector<4x32xf32>
    %206 = vector.extract_strided_slice %201 {offsets = [0, 96], sizes = [4, 32], strides = [1, 1]} : vector<4x128xf32> to vector<4x32xf32>
    %207 = arith.mulf %204, %169 : vector<4x32xf32>
    %208 = arith.mulf %203, %205 : vector<4x32xf32>
    %209 = arith.addf %207, %208 : vector<4x32xf32>
    %210 = math.tanh %209 : vector<4x32xf32>
    %211 = arith.mulf %206, %210 : vector<4x32xf32>
    %cst_68 = arith.constant dense<0.000000e+00> : vector<4x128xf32>
    %212 = tpu.matmul %211, %3, %cst_68 {dimension_numbers = #tpu.dot_dimension_numbers<[1], [0], [0], [1], [0, 0, 1, 1], [], []>} : vector<4x32xf32>, vector<32x128xf32>, vector<4x128xf32> -> vector<4x128xf32>
    %cst_69 = arith.constant dense<0.000000e+00> : vector<4x128xf32>
    %213 = tpu.matmul %190, %7, %cst_69 {dimension_numbers = #tpu.dot_dimension_numbers<[1], [0], [0], [1], [0, 0, 1, 1], [], []>} : vector<4x32xf32>, vector<32x128xf32>, vector<4x128xf32> -> vector<4x128xf32>
    %214 = arith.addf %212, %213 : vector<4x128xf32>
    %215 = arith.addf %214, %15 : vector<4x128xf32>
    %216 = arith.negf %215 : vector<4x128xf32>
    %217 = math.exp %216 : vector<4x128xf32>
    %cst_70 = arith.constant 1.000000e+00 : f32
    %218 = vector.broadcast %cst_70 : f32 to vector<4x128xf32>
    %219 = arith.addf %218, %217 : vector<4x128xf32>
    %220 = arith.divf %218, %219 : vector<4x128xf32>
    %221 = math.tanh %215 : vector<4x128xf32>
    %222 = vector.extract_strided_slice %220 {offsets = [0, 0], sizes = [4, 32], strides = [1, 1]} : vector<4x128xf32> to vector<4x32xf32>
    %223 = vector.extract_strided_slice %220 {offsets = [0, 32], sizes = [4, 32], strides = [1, 1]} : vector<4x128xf32> to vector<4x32xf32>
    %224 = vector.extract_strided_slice %221 {offsets = [0, 64], sizes = [4, 32], strides = [1, 1]} : vector<4x128xf32> to vector<4x32xf32>
    %225 = vector.extract_strided_slice %220 {offsets = [0, 96], sizes = [4, 32], strides = [1, 1]} : vector<4x128xf32> to vector<4x32xf32>
    %226 = arith.mulf %223, %188 : vector<4x32xf32>
    %227 = arith.mulf %222, %224 : vector<4x32xf32>
    %228 = arith.addf %226, %227 : vector<4x32xf32>
    %229 = math.tanh %228 : vector<4x32xf32>
    %230 = arith.mulf %225, %229 : vector<4x32xf32>
    %cst_71 = arith.constant dense<0.000000e+00> : vector<4x16xf32>
    %231 = tpu.matmul %230, %19, %cst_71 {dimension_numbers = #tpu.dot_dimension_numbers<[1], [0], [0], [1], [0, 0, 1, 1], [], []>} : vector<4x32xf32>, vector<32x16xf32>, vector<4x16xf32> -> vector<4x16xf32>
    %232 = arith.addf %231, %22 : vector<4x16xf32>
    %cst_72 = arith.constant dense<0.000000e+00> : vector<4x128xf32>
    %233 = tpu.matmul %230, %1, %cst_72 {dimension_numbers = #tpu.dot_dimension_numbers<[1], [0], [0], [1], [0, 0, 1, 1], [], []>} : vector<4x32xf32>, vector<32x128xf32>, vector<4x128xf32> -> vector<4x128xf32>
    %234 = arith.addf %233, %11 : vector<4x128xf32>
    %cst_73 = arith.constant dense<0.000000e+00> : vector<4x128xf32>
    %235 = tpu.matmul %211, %5, %cst_73 {dimension_numbers = #tpu.dot_dimension_numbers<[1], [0], [0], [1], [0, 0, 1, 1], [], []>} : vector<4x32xf32>, vector<32x128xf32>, vector<4x128xf32> -> vector<4x128xf32>
    %236 = arith.addf %234, %235 : vector<4x128xf32>
    %237 = arith.negf %236 : vector<4x128xf32>
    %238 = math.exp %237 : vector<4x128xf32>
    %cst_74 = arith.constant 1.000000e+00 : f32
    %239 = vector.broadcast %cst_74 : f32 to vector<4x128xf32>
    %240 = arith.addf %239, %238 : vector<4x128xf32>
    %241 = arith.divf %239, %240 : vector<4x128xf32>
    %242 = math.tanh %236 : vector<4x128xf32>
    %243 = vector.extract_strided_slice %241 {offsets = [0, 0], sizes = [4, 32], strides = [1, 1]} : vector<4x128xf32> to vector<4x32xf32>
    %244 = vector.extract_strided_slice %241 {offsets = [0, 32], sizes = [4, 32], strides = [1, 1]} : vector<4x128xf32> to vector<4x32xf32>
    %245 = vector.extract_strided_slice %242 {offsets = [0, 64], sizes = [4, 32], strides = [1, 1]} : vector<4x128xf32> to vector<4x32xf32>
    %246 = vector.extract_strided_slice %241 {offsets = [0, 96], sizes = [4, 32], strides = [1, 1]} : vector<4x128xf32> to vector<4x32xf32>
    %247 = arith.mulf %244, %209 : vector<4x32xf32>
    %248 = arith.mulf %243, %245 : vector<4x32xf32>
    %249 = arith.addf %247, %248 : vector<4x32xf32>
    %250 = math.tanh %249 : vector<4x32xf32>
    %251 = arith.mulf %246, %250 : vector<4x32xf32>
    %cst_75 = arith.constant dense<0.000000e+00> : vector<4x128xf32>
    %252 = tpu.matmul %251, %3, %cst_75 {dimension_numbers = #tpu.dot_dimension_numbers<[1], [0], [0], [1], [0, 0, 1, 1], [], []>} : vector<4x32xf32>, vector<32x128xf32>, vector<4x128xf32> -> vector<4x128xf32>
    %cst_76 = arith.constant dense<0.000000e+00> : vector<4x128xf32>
    %253 = tpu.matmul %230, %7, %cst_76 {dimension_numbers = #tpu.dot_dimension_numbers<[1], [0], [0], [1], [0, 0, 1, 1], [], []>} : vector<4x32xf32>, vector<32x128xf32>, vector<4x128xf32> -> vector<4x128xf32>
    %254 = arith.addf %252, %253 : vector<4x128xf32>
    %255 = arith.addf %254, %15 : vector<4x128xf32>
    %256 = arith.negf %255 : vector<4x128xf32>
    %257 = math.exp %256 : vector<4x128xf32>
    %cst_77 = arith.constant 1.000000e+00 : f32
    %258 = vector.broadcast %cst_77 : f32 to vector<4x128xf32>
    %259 = arith.addf %258, %257 : vector<4x128xf32>
    %260 = arith.divf %258, %259 : vector<4x128xf32>
    %261 = math.tanh %255 : vector<4x128xf32>
    %262 = vector.extract_strided_slice %260 {offsets = [0, 0], sizes = [4, 32], strides = [1, 1]} : vector<4x128xf32> to vector<4x32xf32>
    %263 = vector.extract_strided_slice %260 {offsets = [0, 32], sizes = [4, 32], strides = [1, 1]} : vector<4x128xf32> to vector<4x32xf32>
    %264 = vector.extract_strided_slice %261 {offsets = [0, 64], sizes = [4, 32], strides = [1, 1]} : vector<4x128xf32> to vector<4x32xf32>
    %265 = vector.extract_strided_slice %260 {offsets = [0, 96], sizes = [4, 32], strides = [1, 1]} : vector<4x128xf32> to vector<4x32xf32>
    %266 = arith.mulf %263, %228 : vector<4x32xf32>
    %267 = arith.mulf %262, %264 : vector<4x32xf32>
    %268 = arith.addf %266, %267 : vector<4x32xf32>
    %269 = math.tanh %268 : vector<4x32xf32>
    %270 = arith.mulf %265, %269 : vector<4x32xf32>
    %cst_78 = arith.constant dense<0.000000e+00> : vector<4x16xf32>
    %271 = tpu.matmul %270, %19, %cst_78 {dimension_numbers = #tpu.dot_dimension_numbers<[1], [0], [0], [1], [0, 0, 1, 1], [], []>} : vector<4x32xf32>, vector<32x16xf32>, vector<4x16xf32> -> vector<4x16xf32>
    %272 = arith.addf %271, %22 : vector<4x16xf32>
    %cst_79 = arith.constant dense<0.000000e+00> : vector<4x128xf32>
    %273 = tpu.matmul %270, %1, %cst_79 {dimension_numbers = #tpu.dot_dimension_numbers<[1], [0], [0], [1], [0, 0, 1, 1], [], []>} : vector<4x32xf32>, vector<32x128xf32>, vector<4x128xf32> -> vector<4x128xf32>
    %274 = arith.addf %273, %11 : vector<4x128xf32>
    %cst_80 = arith.constant dense<0.000000e+00> : vector<4x128xf32>
    %275 = tpu.matmul %251, %5, %cst_80 {dimension_numbers = #tpu.dot_dimension_numbers<[1], [0], [0], [1], [0, 0, 1, 1], [], []>} : vector<4x32xf32>, vector<32x128xf32>, vector<4x128xf32> -> vector<4x128xf32>
    %276 = arith.addf %274, %275 : vector<4x128xf32>
    %277 = arith.negf %276 : vector<4x128xf32>
    %278 = math.exp %277 : vector<4x128xf32>
    %cst_81 = arith.constant 1.000000e+00 : f32
    %279 = vector.broadcast %cst_81 : f32 to vector<4x128xf32>
    %280 = arith.addf %279, %278 : vector<4x128xf32>
    %281 = arith.divf %279, %280 : vector<4x128xf32>
    %282 = math.tanh %276 : vector<4x128xf32>
    %283 = vector.extract_strided_slice %281 {offsets = [0, 0], sizes = [4, 32], strides = [1, 1]} : vector<4x128xf32> to vector<4x32xf32>
    %284 = vector.extract_strided_slice %281 {offsets = [0, 32], sizes = [4, 32], strides = [1, 1]} : vector<4x128xf32> to vector<4x32xf32>
    %285 = vector.extract_strided_slice %282 {offsets = [0, 64], sizes = [4, 32], strides = [1, 1]} : vector<4x128xf32> to vector<4x32xf32>
    %286 = vector.extract_strided_slice %281 {offsets = [0, 96], sizes = [4, 32], strides = [1, 1]} : vector<4x128xf32> to vector<4x32xf32>
    %287 = arith.mulf %284, %249 : vector<4x32xf32>
    %288 = arith.mulf %283, %285 : vector<4x32xf32>
    %289 = arith.addf %287, %288 : vector<4x32xf32>
    %290 = math.tanh %289 : vector<4x32xf32>
    %291 = arith.mulf %286, %290 : vector<4x32xf32>
    %cst_82 = arith.constant dense<0.000000e+00> : vector<4x128xf32>
    %292 = tpu.matmul %291, %3, %cst_82 {dimension_numbers = #tpu.dot_dimension_numbers<[1], [0], [0], [1], [0, 0, 1, 1], [], []>} : vector<4x32xf32>, vector<32x128xf32>, vector<4x128xf32> -> vector<4x128xf32>
    %cst_83 = arith.constant dense<0.000000e+00> : vector<4x128xf32>
    %293 = tpu.matmul %270, %7, %cst_83 {dimension_numbers = #tpu.dot_dimension_numbers<[1], [0], [0], [1], [0, 0, 1, 1], [], []>} : vector<4x32xf32>, vector<32x128xf32>, vector<4x128xf32> -> vector<4x128xf32>
    %294 = arith.addf %292, %293 : vector<4x128xf32>
    %295 = arith.addf %294, %15 : vector<4x128xf32>
    %296 = arith.negf %295 : vector<4x128xf32>
    %297 = math.exp %296 : vector<4x128xf32>
    %cst_84 = arith.constant 1.000000e+00 : f32
    %298 = vector.broadcast %cst_84 : f32 to vector<4x128xf32>
    %299 = arith.addf %298, %297 : vector<4x128xf32>
    %300 = arith.divf %298, %299 : vector<4x128xf32>
    %301 = math.tanh %295 : vector<4x128xf32>
    %302 = vector.extract_strided_slice %300 {offsets = [0, 0], sizes = [4, 32], strides = [1, 1]} : vector<4x128xf32> to vector<4x32xf32>
    %303 = vector.extract_strided_slice %300 {offsets = [0, 32], sizes = [4, 32], strides = [1, 1]} : vector<4x128xf32> to vector<4x32xf32>
    %304 = vector.extract_strided_slice %301 {offsets = [0, 64], sizes = [4, 32], strides = [1, 1]} : vector<4x128xf32> to vector<4x32xf32>
    %305 = vector.extract_strided_slice %300 {offsets = [0, 96], sizes = [4, 32], strides = [1, 1]} : vector<4x128xf32> to vector<4x32xf32>
    %306 = arith.mulf %303, %268 : vector<4x32xf32>
    %307 = arith.mulf %302, %304 : vector<4x32xf32>
    %308 = arith.addf %306, %307 : vector<4x32xf32>
    %309 = math.tanh %308 : vector<4x32xf32>
    %310 = arith.mulf %305, %309 : vector<4x32xf32>
    %cst_85 = arith.constant dense<0.000000e+00> : vector<4x16xf32>
    %311 = tpu.matmul %310, %19, %cst_85 {dimension_numbers = #tpu.dot_dimension_numbers<[1], [0], [0], [1], [0, 0, 1, 1], [], []>} : vector<4x32xf32>, vector<32x16xf32>, vector<4x16xf32> -> vector<4x16xf32>
    %312 = arith.addf %311, %22 : vector<4x16xf32>
    %cst_86 = arith.constant dense<0.000000e+00> : vector<4x128xf32>
    %313 = tpu.matmul %310, %1, %cst_86 {dimension_numbers = #tpu.dot_dimension_numbers<[1], [0], [0], [1], [0, 0, 1, 1], [], []>} : vector<4x32xf32>, vector<32x128xf32>, vector<4x128xf32> -> vector<4x128xf32>
    %314 = arith.addf %313, %11 : vector<4x128xf32>
    %cst_87 = arith.constant dense<0.000000e+00> : vector<4x128xf32>
    %315 = tpu.matmul %291, %5, %cst_87 {dimension_numbers = #tpu.dot_dimension_numbers<[1], [0], [0], [1], [0, 0, 1, 1], [], []>} : vector<4x32xf32>, vector<32x128xf32>, vector<4x128xf32> -> vector<4x128xf32>
    %316 = arith.addf %314, %315 : vector<4x128xf32>
    %317 = arith.negf %316 : vector<4x128xf32>
    %318 = math.exp %317 : vector<4x128xf32>
    %cst_88 = arith.constant 1.000000e+00 : f32
    %319 = vector.broadcast %cst_88 : f32 to vector<4x128xf32>
    %320 = arith.addf %319, %318 : vector<4x128xf32>
    %321 = arith.divf %319, %320 : vector<4x128xf32>
    %322 = math.tanh %316 : vector<4x128xf32>
    %323 = vector.extract_strided_slice %321 {offsets = [0, 0], sizes = [4, 32], strides = [1, 1]} : vector<4x128xf32> to vector<4x32xf32>
    %324 = vector.extract_strided_slice %321 {offsets = [0, 32], sizes = [4, 32], strides = [1, 1]} : vector<4x128xf32> to vector<4x32xf32>
    %325 = vector.extract_strided_slice %322 {offsets = [0, 64], sizes = [4, 32], strides = [1, 1]} : vector<4x128xf32> to vector<4x32xf32>
    %326 = vector.extract_strided_slice %321 {offsets = [0, 96], sizes = [4, 32], strides = [1, 1]} : vector<4x128xf32> to vector<4x32xf32>
    %327 = arith.mulf %324, %289 : vector<4x32xf32>
    %328 = arith.mulf %323, %325 : vector<4x32xf32>
    %329 = arith.addf %327, %328 : vector<4x32xf32>
    %330 = math.tanh %329 : vector<4x32xf32>
    %331 = arith.mulf %326, %330 : vector<4x32xf32>
    %cst_89 = arith.constant dense<0.000000e+00> : vector<4x128xf32>
    %332 = tpu.matmul %331, %3, %cst_89 {dimension_numbers = #tpu.dot_dimension_numbers<[1], [0], [0], [1], [0, 0, 1, 1], [], []>} : vector<4x32xf32>, vector<32x128xf32>, vector<4x128xf32> -> vector<4x128xf32>
    %cst_90 = arith.constant dense<0.000000e+00> : vector<4x128xf32>
    %333 = tpu.matmul %310, %7, %cst_90 {dimension_numbers = #tpu.dot_dimension_numbers<[1], [0], [0], [1], [0, 0, 1, 1], [], []>} : vector<4x32xf32>, vector<32x128xf32>, vector<4x128xf32> -> vector<4x128xf32>
    %334 = arith.addf %332, %333 : vector<4x128xf32>
    %335 = arith.addf %334, %15 : vector<4x128xf32>
    %336 = arith.negf %335 : vector<4x128xf32>
    %337 = math.exp %336 : vector<4x128xf32>
    %cst_91 = arith.constant 1.000000e+00 : f32
    %338 = vector.broadcast %cst_91 : f32 to vector<4x128xf32>
    %339 = arith.addf %338, %337 : vector<4x128xf32>
    %340 = arith.divf %338, %339 : vector<4x128xf32>
    %341 = math.tanh %335 : vector<4x128xf32>
    %342 = vector.extract_strided_slice %340 {offsets = [0, 0], sizes = [4, 32], strides = [1, 1]} : vector<4x128xf32> to vector<4x32xf32>
    %343 = vector.extract_strided_slice %340 {offsets = [0, 32], sizes = [4, 32], strides = [1, 1]} : vector<4x128xf32> to vector<4x32xf32>
    %344 = vector.extract_strided_slice %341 {offsets = [0, 64], sizes = [4, 32], strides = [1, 1]} : vector<4x128xf32> to vector<4x32xf32>
    %345 = vector.extract_strided_slice %340 {offsets = [0, 96], sizes = [4, 32], strides = [1, 1]} : vector<4x128xf32> to vector<4x32xf32>
    %346 = arith.mulf %343, %308 : vector<4x32xf32>
    %347 = arith.mulf %342, %344 : vector<4x32xf32>
    %348 = arith.addf %346, %347 : vector<4x32xf32>
    %349 = math.tanh %348 : vector<4x32xf32>
    %350 = arith.mulf %345, %349 : vector<4x32xf32>
    %cst_92 = arith.constant dense<0.000000e+00> : vector<4x16xf32>
    %351 = tpu.matmul %350, %19, %cst_92 {dimension_numbers = #tpu.dot_dimension_numbers<[1], [0], [0], [1], [0, 0, 1, 1], [], []>} : vector<4x32xf32>, vector<32x16xf32>, vector<4x16xf32> -> vector<4x16xf32>
    %352 = arith.addf %351, %22 : vector<4x16xf32>
    %353 = tpu.concatenate %72, %112, %152, %192, %232, %272, %312, %352 in 1 : vector<4x16xf32>, vector<4x16xf32>, vector<4x16xf32>, vector<4x16xf32>, vector<4x16xf32>, vector<4x16xf32>, vector<4x16xf32>, vector<4x16xf32> -> vector<4x128xf32>
    %c0_93 = arith.constant 0 : index
    %c0_94 = arith.constant 0 : index
    %354 = vector.load %arg10[%c0_93, %c0_94] : memref<4x128xf32, #tpu.memory_space<vmem>>, vector<4x128xf32>
    tpu.vector_store %arg10[%c0_93, %c0_94], %353 {strides = array<i32>} : memref<4x128xf32, #tpu.memory_space<vmem>>, vector<4x128xf32>,
    %c0_95 = arith.constant 0 : index
    %c0_96 = arith.constant 0 : index
    %c0_97 = arith.constant 0 : index
    %355 = vector.load %arg11[%c0_95, %c0_96, %c0_97] : memref<2x4x32xf32, #tpu.memory_space<vmem>>, vector<1x4x32xf32>
    %356 = vector.shape_cast %355 : vector<1x4x32xf32> to vector<4x32xf32>
    %357 = vector.shape_cast %331 : vector<4x32xf32> to vector<1x4x32xf32>
    tpu.vector_store %arg11[%c0_95, %c0_96, %c0_97], %357 {strides = array<i32>} : memref<2x4x32xf32, #tpu.memory_space<vmem>>, vector<1x4x32xf32>,
    %c0_98 = arith.constant 0 : index
    %c0_99 = arith.constant 0 : index
    %c0_100 = arith.constant 0 : index
    %358 = vector.load %arg12[%c0_98, %c0_99, %c0_100] : memref<2x4x32xf32, #tpu.memory_space<vmem>>, vector<1x4x32xf32>
    %359 = vector.shape_cast %358 : vector<1x4x32xf32> to vector<4x32xf32>
    %360 = vector.shape_cast %329 : vector<4x32xf32> to vector<1x4x32xf32>
    tpu.vector_store %arg12[%c0_98, %c0_99, %c0_100], %360 {strides = array<i32>} : memref<2x4x32xf32, #tpu.memory_space<vmem>>, vector<1x4x32xf32>,
    %c1_101 = arith.constant 1 : index
    %c0_102 = arith.constant 0 : index
    %c0_103 = arith.constant 0 : index
    %361 = vector.load %arg11[%c1_101, %c0_102, %c0_103] : memref<2x4x32xf32, #tpu.memory_space<vmem>>, vector<1x4x32xf32>
    %362 = vector.shape_cast %361 : vector<1x4x32xf32> to vector<4x32xf32>
    %363 = vector.shape_cast %350 : vector<4x32xf32> to vector<1x4x32xf32>
    tpu.vector_store %arg11[%c1_101, %c0_102, %c0_103], %363 {strides = array<i32>} : memref<2x4x32xf32, #tpu.memory_space<vmem>>, vector<1x4x32xf32>,
    %c1_104 = arith.constant 1 : index
    %c0_105 = arith.constant 0 : index
    %c0_106 = arith.constant 0 : index
    %364 = vector.load %arg12[%c1_104, %c0_105, %c0_106] : memref<2x4x32xf32, #tpu.memory_space<vmem>>, vector<1x4x32xf32>
    %365 = vector.shape_cast %364 : vector<1x4x32xf32> to vector<4x32xf32>
    %366 = vector.shape_cast %348 : vector<4x32xf32> to vector<1x4x32xf32>
    tpu.vector_store %arg12[%c1_104, %c0_105, %c0_106], %366 {strides = array<i32>} : memref<2x4x32xf32, #tpu.memory_space<vmem>>, vector<1x4x32xf32>,
    return
  }
}

</mosaic_0001>

<bundles_post_ra>
// kernel: tpu_custom_call.1
= control target key start
LH: loop header
LB: loop body
LE: loop exit
PB: predicated region body
PF: predicated region fallthrough
CT: control target
= control target key end

     0   :  { %18 = vsyncpa [#allocation3], 0  ;;  %s2677_s0 = inlined_call_operand.vmem [shape: f32[4,16], index: 0, kind: input, shape index: {}]   ;;  %s2678_s1 = inlined_call_operand.vmem [shape: f32[2,4,32], index: 1, kind: input, shape index: {}]   ;;  %s2679_s2 = inlined_call_operand.vmem [shape: f32[2,4,32], index: 2, kind: input, shape index: {}]   ;;  %s2680_s3 = inlined_call_operand.vmem [shape: f32[16,128], index: 3, kind: input, shape index: {}]   ;;  %s2681_s4 = inlined_call_operand.vmem [shape: f32[1,128], index: 4, kind: input, shape index: {}]   ;;  %s2682_s5 = inlined_call_operand.hbm [shape: f32[2,32,128], index: 5, kind: input, shape index: {}]   ;;  %s2683_s6 = inlined_call_operand.hbm [shape: f32[2,32,128], index: 6, kind: input, shape index: {}]   ;;  %s2684_s7 = inlined_call_operand.vmem [shape: f32[2,1,128], index: 7, kind: input, shape index: {}]   ;;  %s2685_s8 = inlined_call_operand.vmem [shape: f32[32,16], index: 8, kind: input, shape index: {}]   ;;  %s2686_s9 = inlined_call_operand.vmem [shape: f32[1,16], index: 9, kind: input, shape index: {}]   ;;  %s2687_s10 = inlined_call_operand.hbm [shape: f32[4,128], index: 10, kind: output, shape index: {0}]   ;;  %s2688_s11 = inlined_call_operand.hbm [shape: f32[2,4,32], index: 11, kind: output, shape index: {1}]   ;;  %s2689_s12 = inlined_call_operand.hbm [shape: f32[2,4,32], index: 12, kind: output, shape index: {2}]  }
   0x1   :  { %19 = vsyncpa [#allocation6], 0 }
   0x2   :  { %20 = vsyncpa [#allocation4], 0 }
   0x3   :  { %21 = vsyncpa [#allocation9], 0  ;;  %s36_s23 = sshll.u32 %s2682_s5, 4  ;;  %s2086_s24 = smov [#allocation2]   ;;  %s37_s23 = int_to_ptr.hbm [resolvable:$true] %s36_s23 }
   0x4   :  { %s38_s25 = sshll.u32 %s2086_s24, 4  ;;  %s49_s28 = sshll.u32 %s2683_s6, 4  ;;  %s39_s25 = int_to_ptr.vmem [resolvable:$true] %s38_s25  ;;  %s50_s28 = int_to_ptr.hbm [resolvable:$true] %s49_s28 }
   0x5   :  { %s2087_s29 = smov 128   ;;  %s2088_s30 = smov 8  }
   0x6   :  { %44 = dma.hbm_to_vmem [thread:$0]  %s37_s23, 1024, %s39_s25, [#allocation3], %s2087_s29, %s2087_s29, %s2088_s30  }
   0x7   :  { %s2089_s13 = smov [#allocation5]  }
   0x8   :  { %s51_s14 = sshll.u32 %s2089_s13, 4  ;;  %s52_s14 = int_to_ptr.vmem [resolvable:$true] %s51_s14 }
   0x9   :  { %57 = dma.hbm_to_vmem [thread:$0]  %s50_s28, 1024, %s52_s14, [#allocation6], %s2087_s29, %s2087_s29, %s2088_s30  }
   0xa   :  { %2078 = dma.done.wait [#allocation3], 1024  }
   0xb   :  { %2079 = vsyncadd [#allocation3], 4294966272 }
   0xc   :  { %2080 = dma.done.wait [#allocation6], 1024  }
   0xd   :  { %2081 = vsyncadd [#allocation6], 4294966272  ;;  %v2172_v0 = vld [vmem:[#allocation5 + $0x18] sm:$0xff]  ;;  %v119_v1 = vld [vmem:[%s2680_s3 + $0x8] sm:$0xff]  ;;  %vm120_vm0 = vcmask 130048   ;;  %vm144_vm1 = vcmask 261120  }
   0xe   :  { %v2177_v2 = vld [vmem:[#allocation5 + $0x10] sm:$0xff]  ;;  %160 = vmatpush.msra.mxu1 %v2172_v0  ;;  %138 = vmatpush.msra.mxu0 %v119_v1  ;;  %v118_v3 = vld [vmem:[%s2680_s3] sm:$0xff]  ;;  %v2186_v5 = vld [vmem:[#allocation5 + $0x8] sm:$0xff]  ;;  %s2090_s21 = smov 64   ;;  %s2091_s24 = smov 32  }
   0xf   :  { %v117_v4 = vld [vmem:[%s2677_s0] sm:$0xf]  ;;  %v2211_v35 = vld [vmem:[#allocation5 + $0x38] sm:$0xff]  ;;  %v2213_v36 = vld [vmem:[#allocation5 + $0x30] sm:$0xff]  ;;  %s2092_s3 = smov 16   ;;  %s2094_s22 = smov 96  }
  0x10   :  { %161 = vmatpush.msra.mxu1 %v2177_v2  ;;  %139 = vmatpush.msra.mxu0 %v118_v3  ;;  %v2190_v6 = vld [vmem:[#allocation5] sm:$0xff]  ;;  %v2216_v37 = vld [vmem:[#allocation2 + $0x38] sm:$0xff]  ;;  %v2218_v38 = vld [vmem:[#allocation5 + $0x28] sm:$0xff]  ;;  %s2095_s23 = smov 48   ;;  %s1702_s26 = sshll.u32 %s2688_s11, 4  ;;  %s1703_s26 = int_to_ptr.hbm [resolvable:$true] %s1702_s26 }
  0x11   :  { %1741 = vmatmul.msk.f32.vlgmr.msra.gmra.mxu0 %vm120_vm0, %v117_v4  ;;  %v111_v7 = vld [vmem:[%s2678_s1] sm:$0xf]  ;;  %225 = vmatpush.msra.mxu2 %v2211_v35  ;;  %v2221_v39 = vld [vmem:[#allocation2 + $0x30] sm:$0xff]  ;;  %v2224_v40 = vld [vmem:[#allocation2 + $0x28] sm:$0xff]  ;;  %s1715_s29 = sshll.u32 %s2689_s12, 4  ;;  %s2098_s30 = smov [#allocation10]   ;;  %s1716_s29 = int_to_ptr.hbm [resolvable:$true] %s1715_s29 }
  0x12   :  { %162 = vmatpush.msra.mxu1 %v2186_v5  ;;  %v1812_v8 = vld [vmem:[%s2681_s4] ss:$0 sm:$0xff]  ;;  %250 = vmatpush.msra.mxu3 %v2216_v37  ;;  %v1739_v42 = vld [vmem:[%s2678_s1 + $0x4] sm:$0xf]  ;;  %v2261_v48 = vld [vmem:[%s2684_s7 + $0x1] ss:$0 sm:$0xff] }
  0x13   :  { %v114_v14 = vld [vmem:[%s2679_s2] sm:$0xf]  ;;  %226 = vmatpush.msra.mxu2 %v2213_v36  ;;  %v1740_v46 = vld [vmem:[%s2679_s2 + $0x4] sm:$0xf]  ;;  %s2097_s2 = smov 4   ;;  %s1713_s13 = sshll.u32 %s2098_s30, 4  ;;  %s1714_s13 = int_to_ptr.vmem [resolvable:$true] %s1713_s13 }
  0x14   :  { %163 = vmatpush.msra.mxu1 %v2190_v6  ;;  %v2226_v41 = vld [vmem:[#allocation5 + $0x20] sm:$0xff]  ;;  %251 = vmatpush.msra.mxu3 %v2221_v39  ;;  %s2099_s11 = smov 112   ;;  %s2100_s14 = smov [#allocation7]  }
  0x15   :  { %1742 = vmatmul.msk.f32.vlgmr.msra.gmra.mxu1 %vm144_vm1, %v111_v7  ;;  %227 = vmatpush.msra.mxu2 %v2218_v38  ;;  %v2241_v45 = vld [vmem:[#allocation2 + $0x20] sm:$0xff]  ;;  %s1690_s5 = sshll.u32 %s2100_s14, 4  ;;  %s1691_s5 = int_to_ptr.vmem [resolvable:$true] %s1690_s5 }
  0x16   :  { %252 = vmatpush.msra.mxu3 %v2224_v40 }
  0x17   :  { %228 = vmatpush.msra.mxu2 %v2226_v41 }
  0x18   :  { %1744 = vmatmul.msk.f32.vlgmr.msra.gmra.mxu2 %vm144_vm1, %v1739_v42  ;;  %253 = vmatpush.msra.mxu3 %v2241_v45 }
  0x19   :  { %357 = vmatpush.msrb.mxu2 %v2172_v0 }
  0x1a   :  { %415 = vmatpush.msrb.mxu3 %v2211_v35 }
  0x1b   :  { %358 = vmatpush.msrb.mxu2 %v2177_v2 }
  0x1c   :  { %416 = vmatpush.msrb.mxu3 %v2213_v36 }
  0x1d   :  { %359 = vmatpush.msrb.mxu2 %v2186_v5 }
  0x1e   :  { %417 = vmatpush.msrb.mxu3 %v2218_v38 }
  0x1f   :  { %360 = vmatpush.msrb.mxu2 %v2190_v6 }
  0x20   :  { %418 = vmatpush.msrb.mxu3 %v2226_v41 }
  0x8e   :  { %v141_v9 = vpop.f32.mrf.mxu0 }
  0x8f   :  { %v142_v10 = vadd.f32 %v1812_v8, %v141_v9 }
  0x92   :  { %v165_v11 = vpop.f32.mrf.mxu1 }
  0x93   :  { %v168_v12 = vadd.f32 %v165_v11, %v142_v10 }
  0x95   :  { %1816 = vtanh.f32 %v168_v12  ;;  %v1743_v15 = vmul.f32 -1.442695, %v168_v12 }
  0x97   :  { %1818 = vpow2.f32 %v1743_v15  ;;  %v2275_v15 = vld [vmem:[%s2685_s8 + $0x18] sm:$0xff] }
  0x98   :  { %317 = vmatpush.msrb.mxu0 %v2275_v15 }
  0x9b   :  { %v1817_v13 = vpop.eup %1816  ;;  %v230_v49 = vpop.f32.mrf.mxu2 }
  0x9c   :  { %195 = vrot.lane.b32.xlu0 %v1817_v13, %s2090_s21 }
  0x9d   :  { %v1819_v16 = vpop.eup %1818 }
  0x9e   :  { %v172_v17 = vadd.f32 1.0, %v1819_v16  ;;  %v2277_v16 = vld [vmem:[#allocation2 + $0x10] sm:$0xff] }
  0xa0   :  { %1820 = vrcp.f32 %v172_v17  ;;  %v184_v23 = vand.u32 2147483648, %v172_v17  ;;  %vm178_vm3 = vweird.f32 %v172_v17  ;;  %v182_v24 = vand.u32 2147483647, %v172_v17 }
  0xa2   :  { %v185_v26 = vor.u32 1.1754944e-38, %v184_v23  ;;  %vm183_vm5 = vcmp.eq.f32.partialorder %v182_v24, 8.507059e+37 }
  0xa4   :  { %190 = vrot.lane.b32.xlu0 %v114_v14, %s2091_s24  ;;  %v2270_v14 = vld [vmem:[#allocation2 + $0x18] sm:$0xff] }
  0xa5   :  { %337 = vmatpush.msrb.mxu1 %v2270_v14  ;;  %523 = vmatpush.msra.mxu2 %v2270_v14 }
  0xa6   :  { %v1821_v18 = vpop.eup %1820 }
  0xa7   :  { %v174_v19 = vmul.f32 %v1821_v18, %v172_v17  ;;  %vm179_vm2 = vweird.f32 %v1821_v18  ;;  %v2284_v17 = vld [vmem:[%s2685_s8 + $0x10] sm:$0xff]  ;;  %338 = vmatpush.msrb.mxu1 %v2277_v16  ;;  %524 = vmatpush.msra.mxu2 %v2277_v16 }
  0xa8   :  { %vm180_vm4 = vmor %vm178_vm3, %vm179_vm2  ;;  %318 = vmatpush.msrb.mxu0 %v2284_v17 }
  0xa9   :  { %v175_v20 = vsub.f32 1.0, %v174_v19  ;;  %v2291_v19 = vld [vmem:[%s2685_s8 + $0x8] sm:$0xff] }
  0xaa   :  { %319 = vmatpush.msrb.mxu0 %v2291_v19 }
  0xab   :  { %v176_v21 = vmul.f32 %v1821_v18, %v175_v20  ;;  %v2296_v20 = vld [vmem:[#allocation2] sm:$0xff] }
  0xac   :  { %280 = vrot.lane.b32.xlu0 %v1740_v46, %s2091_s24 }
  0xad   :  { %v177_v22 = vadd.f32 %v1821_v18, %v176_v21  ;;  %v2301_v21 = vld [vmem:[%s2685_s8] sm:$0xff]  ;;  %s1692_s8 = sshll.u32 %s2687_s10, 4  ;;  %s1693_s8 = int_to_ptr.hbm [resolvable:$true] %s1692_s8 }
  0xae   :  { %320 = vmatpush.msrb.mxu0 %v2301_v21 }
  0xaf   :  { %v181_v25 = vsel %vm180_vm4, %v1821_v18, %v177_v22  ;;  %v2286_v18 = vld [vmem:[#allocation2 + $0x8] sm:$0xff] }
  0xb0   :  { %v186_v28 = vsel %vm183_vm5, %v185_v26, %v181_v25  ;;  %339 = vmatpush.msrb.mxu1 %v2286_v18  ;;  %525 = vmatpush.msra.mxu2 %v2286_v18  ;;  %v2341_v25 = vld [vmem:[%s2684_s7] ss:$0 sm:$0xff] }
  0xb1   :  { %440 = vmatpush.msra.mxu0 %v2216_v37 }
  0xb2   :  { %340 = vmatpush.msrb.mxu1 %v2296_v20  ;;  %526 = vmatpush.msra.mxu2 %v2296_v20 }
  0xb3   :  { %441 = vmatpush.msra.mxu0 %v2221_v39 }
  0xb4   :  { %503 = vmatpush.msra.mxu1 %v2275_v15 }
  0xb5   :  { %442 = vmatpush.msra.mxu0 %v2224_v40 }
  0xb6   :  { %504 = vmatpush.msra.mxu1 %v2284_v17 }
  0xb7   :  { %443 = vmatpush.msra.mxu0 %v2241_v45 }
  0xb8   :  { %505 = vmatpush.msra.mxu1 %v2291_v19 }
  0xba   :  { %506 = vmatpush.msra.mxu1 %v2301_v21 }
 0x10e   :  { %v196_v27 = vpop.permute.xlu0 %195 }
 0x10f   :  { %v198_v29 = vmul.f32 %v196_v27, %v186_v28 }
 0x111   :  { %200 = vrot.lane.b32.xlu1 %v198_v29, %s2091_s24 }
 0x116   :  { %v191_v30 = vpop.permute.xlu0 %190 }
 0x117   :  { %v193_v31 = vmul.f32 %v191_v30, %v186_v28 }
 0x11e   :  { %v281_v9 = vpop.permute.xlu0 %280 }
 0x183   :  { %v201_v32 = vpop.permute.xlu1 %200 }
 0x184   :  { %v2207_v33 = vadd.f32 %v201_v32, %v193_v31 }
 0x186   :  { %1822 = vtanh.f32 %v2207_v33 }
 0x18c   :  { %v1823_v34 = vpop.eup %1822 }
 0x18d   :  { %206 = vrot.lane.b32.xlu1 %v1823_v34, %s2090_s21 }
 0x1ff   :  { %v207_v43 = vpop.permute.xlu1 %206 }
 0x200   :  { %v209_v44 = vmul.f32 %v207_v43, %v186_v28 }
 0x202   :  { %234 = vrot.lane.b32.xlu2 %v209_v44, %s2091_s24 }
 0x25c   :  { %v235_v47 = vpop.permute.xlu2 %234 }
 0x25d   :  { %1745 = vmatmul.msk.f32.vlgmr.msra.gmra.mxu3 %vm144_vm1, %v235_v47  ;;  %1749 = vmatmul.msk.f32.vlgmr.msrb.gmra.mxu2 %vm144_vm1, %v235_v47 }
 0x25e   :  { %543 = vmatpush.msra.mxu3 %v2172_v0  ;;  %689 = vmatpush.msrb.mxu2 %v2275_v15 }
 0x260   :  { %544 = vmatpush.msra.mxu3 %v2177_v2  ;;  %690 = vmatpush.msrb.mxu2 %v2284_v17 }
 0x262   :  { %545 = vmatpush.msra.mxu3 %v2186_v5  ;;  %691 = vmatpush.msrb.mxu2 %v2291_v19 }
 0x264   :  { %546 = vmatpush.msra.mxu3 %v2190_v6  ;;  %692 = vmatpush.msrb.mxu2 %v2301_v21 }
 0x2e0   :  { %v255_v50 = vpop.f32.mrf.mxu3  ;;  %v362_v28 = vpop.f32.mrf.mxu2 }
 0x2e1   :  { %v256_v51 = vadd.f32 %v255_v50, %v230_v49 }
 0x2e3   :  { %v258_v52 = vadd.f32 %v2261_v48, %v256_v51 }
 0x2e5   :  { %1824 = vtanh.f32 %v258_v52  ;;  %v1746_v54 = vmul.f32 -1.442695, %v258_v52 }
 0x2e7   :  { %1826 = vpow2.f32 %v1746_v54 }
 0x2eb   :  { %v1825_v53 = vpop.eup %1824 }
 0x2ec   :  { %285 = vrot.lane.b32.xlu2 %v1825_v53, %s2090_s21 }
 0x2ed   :  { %v1827_v55 = vpop.eup %1826 }
 0x2ee   :  { %v262_v56 = vadd.f32 1.0, %v1827_v55 }
 0x2f0   :  { %1828 = vrcp.f32 %v262_v56  ;;  %v274_v62 = vand.u32 2147483648, %v262_v56  ;;  %vm268_vm7 = vweird.f32 %v262_v56  ;;  %v272_v63 = vand.u32 2147483647, %v262_v56 }
 0x2f2   :  { %v275_v3 = vor.u32 1.1754944e-38, %v274_v62  ;;  %vm273_vm9 = vcmp.eq.f32.partialorder %v272_v63, 8.507059e+37 }
 0x2f6   :  { %v1829_v57 = vpop.eup %1828 }
 0x2f7   :  { %v264_v58 = vmul.f32 %v1829_v57, %v262_v56  ;;  %vm269_vm6 = vweird.f32 %v1829_v57 }
 0x2f8   :  { %vm270_vm8 = vmor %vm268_vm7, %vm269_vm6 }
 0x2f9   :  { %v265_v59 = vsub.f32 1.0, %v264_v58 }
 0x2fb   :  { %v266_v60 = vmul.f32 %v1829_v57, %v265_v59 }
 0x2fd   :  { %v267_v61 = vadd.f32 %v1829_v57, %v266_v60 }
 0x2ff   :  { %v271_v1 = vsel %vm270_vm8, %v1829_v57, %v267_v61 }
 0x300   :  { %v276_v4 = vsel %vm273_vm9, %v275_v3, %v271_v1 }
 0x301   :  { %v283_v10 = vmul.f32 %v281_v9, %v276_v4 }
 0x346   :  { %v286_v7 = vpop.permute.xlu2 %285 }
 0x347   :  { %v288_v8 = vmul.f32 %v286_v7, %v276_v4 }
 0x349   :  { %290 = vrot.lane.b32.xlu1 %v288_v8, %s2091_s24 }
 0x3bb   :  { %v291_v11 = vpop.permute.xlu1 %290 }
 0x3bc   :  { %v2266_v12 = vadd.f32 %v291_v11, %v283_v10 }
 0x3be   :  { %1830 = vtanh.f32 %v2266_v12 }
 0x3c4   :  { %v1831_v13 = vpop.eup %1830 }
 0x3c5   :  { %296 = vrot.lane.b32.xlu2 %v1831_v13, %s2090_s21 }
 0x41f   :  { %v297_v22 = vpop.permute.xlu2 %296 }
 0x420   :  { %v299_v23 = vmul.f32 %v297_v22, %v276_v4 }
 0x422   :  { %301 = vrot.lane.b32.xlu0 %v299_v23, %s2091_s24 }
 0x494   :  { %v302_v24 = vpop.permute.xlu0 %301 }
 0x495   :  { %1747 = vmatmul.msk.f32.vlgmr.msrb.gmra.mxu0 %vm144_vm1, %v302_v24  ;;  %1748 = vmatmul.msk.f32.vlgmr.msrb.gmra.mxu1 %vm144_vm1, %v302_v24 }
 0x496   :  { %1751 = vmatmul.msk.f32.vlgmr.msrb.gmra.mxu3 %vm144_vm1, %v302_v24  ;;  %601 = vmatpush.msrb.mxu0 %v2211_v35 }
 0x497   :  { %626 = vmatpush.msrb.mxu1 %v2216_v37  ;;  %709 = vmatpush.msrb.mxu3 %v2270_v14 }
 0x498   :  { %602 = vmatpush.msrb.mxu0 %v2213_v36 }
 0x499   :  { %627 = vmatpush.msrb.mxu1 %v2221_v39  ;;  %710 = vmatpush.msrb.mxu3 %v2277_v16 }
 0x49a   :  { %603 = vmatpush.msrb.mxu0 %v2218_v38 }
 0x49b   :  { %628 = vmatpush.msrb.mxu1 %v2224_v40  ;;  %711 = vmatpush.msrb.mxu3 %v2286_v18 }
 0x49c   :  { %604 = vmatpush.msrb.mxu0 %v2226_v41 }
 0x49d   :  { %629 = vmatpush.msrb.mxu1 %v2241_v45  ;;  %712 = vmatpush.msrb.mxu3 %v2296_v20 }
 0x512   :  { %v342_v26 = vpop.f32.mrf.mxu1 }
 0x513   :  { %v343_v27 = vadd.f32 %v2341_v25, %v342_v26 }
 0x515   :  { %v365_v29 = vadd.f32 %v362_v28, %v343_v27 }
 0x517   :  { %1832 = vtanh.f32 %v365_v29  ;;  %v1750_v31 = vmul.f32 -1.442695, %v365_v29 }
 0x519   :  { %1834 = vpow2.f32 %v1750_v31  ;;  %v420_v63 = vpop.f32.mrf.mxu3 }
 0x51d   :  { %v1833_v30 = vpop.eup %1832 }
 0x51e   :  { %388 = vrot.lane.b32.xlu1 %v1833_v30, %s2090_s21 }
 0x51f   :  { %v1835_v32 = vpop.eup %1834 }
 0x520   :  { %v369_v34 = vadd.f32 1.0, %v1835_v32 }
 0x522   :  { %1836 = vrcp.f32 %v369_v34  ;;  %v381_v49 = vand.u32 2147483648, %v369_v34  ;;  %vm375_vm11 = vweird.f32 %v369_v34  ;;  %v379_v50 = vand.u32 2147483647, %v369_v34 }
 0x524   :  { %v382_v52 = vor.u32 1.1754944e-38, %v381_v49  ;;  %vm380_vm13 = vcmp.eq.f32.partialorder %v379_v50, 8.507059e+37 }
 0x528   :  { %v1837_v42 = vpop.eup %1836 }
 0x529   :  { %v371_v43 = vmul.f32 %v1837_v42, %v369_v34  ;;  %vm376_vm10 = vweird.f32 %v1837_v42 }
 0x52a   :  { %vm377_vm12 = vmor %vm375_vm11, %vm376_vm10 }
 0x52b   :  { %v372_v44 = vsub.f32 1.0, %v371_v43 }
 0x52d   :  { %v373_v46 = vmul.f32 %v1837_v42, %v372_v44 }
 0x52f   :  { %v374_v47 = vadd.f32 %v1837_v42, %v373_v46 }
 0x531   :  { %v378_v51 = vsel %vm377_vm12, %v1837_v42, %v374_v47 }
 0x532   :  { %v383_v54 = vsel %vm380_vm13, %v382_v52, %v378_v51 }
 0x533   :  { %v386_v56 = vmul.f32 %v383_v54, %v2207_v33  ;;  %v2362_v33 = vpop.f32.mrf.mxu0 }
 0x590   :  { %v389_v53 = vpop.permute.xlu1 %388 }
 0x591   :  { %v391_v55 = vmul.f32 %v389_v53, %v383_v54 }
 0x593   :  { %393 = vrot.lane.b32.xlu2 %v391_v55, %s2091_s24 }
 0x5ed   :  { %v394_v57 = vpop.permute.xlu2 %393 }
 0x5ee   :  { %v2347_v58 = vadd.f32 %v394_v57, %v386_v56 }
 0x5f0   :  { %1838 = vtanh.f32 %v2347_v58 }
 0x5f6   :  { %v1839_v59 = vpop.eup %1838 }
 0x5f7   :  { %399 = vrot.lane.b32.xlu0 %v1839_v59, %s2090_s21 }
 0x669   :  { %v400_v60 = vpop.permute.xlu0 %399 }
 0x66a   :  { %v402_v61 = vmul.f32 %v400_v60, %v383_v54 }
 0x66c   :  { %424 = vrot.lane.b32.xlu1 %v402_v61, %s2091_s24 }
 0x6de   :  { %v425_v62 = vpop.permute.xlu1 %424 }
 0x6df   :  { %1752 = vmatmul.msk.f32.vlgmr.msra.gmra.mxu0 %vm144_vm1, %v425_v62  ;;  %1756 = vmatmul.msk.f32.vlgmr.msra.gmra.mxu3 %vm144_vm1, %v425_v62 }
 0x6e0   :  { %729 = vmatpush.msra.mxu0 %v2172_v0  ;;  %875 = vmatpush.msra.mxu3 %v2275_v15 }
 0x6e2   :  { %730 = vmatpush.msra.mxu0 %v2177_v2  ;;  %876 = vmatpush.msra.mxu3 %v2284_v17 }
 0x6e4   :  { %731 = vmatpush.msra.mxu0 %v2186_v5  ;;  %877 = vmatpush.msra.mxu3 %v2291_v19 }
 0x6e6   :  { %732 = vmatpush.msra.mxu0 %v2190_v6  ;;  %878 = vmatpush.msra.mxu3 %v2301_v21 }
 0x75c   :  { %v445_v1 = vpop.f32.mrf.mxu0 }
 0x75d   :  { %v446_v3 = vadd.f32 %v445_v1, %v420_v63 }
 0x75f   :  { %v448_v4 = vadd.f32 %v2261_v48, %v446_v3 }
 0x761   :  { %1840 = vtanh.f32 %v448_v4  ;;  %v1753_v8 = vmul.f32 -1.442695, %v448_v4 }
 0x762   :  { %v548_v51 = vpop.f32.mrf.mxu3 }
 0x763   :  { %1842 = vpow2.f32 %v1753_v8 }
 0x767   :  { %v1841_v7 = vpop.eup %1840 }
 0x768   :  { %471 = vrot.lane.b32.xlu2 %v1841_v7, %s2090_s21 }
 0x769   :  { %v1843_v9 = vpop.eup %1842 }
 0x76a   :  { %v452_v10 = vadd.f32 1.0, %v1843_v9 }
 0x76c   :  { %1844 = vrcp.f32 %v452_v10  ;;  %v464_v26 = vand.u32 2147483648, %v452_v10  ;;  %vm458_vm15 = vweird.f32 %v452_v10  ;;  %v462_v27 = vand.u32 2147483647, %v452_v10 }
 0x76e   :  { %v465_v29 = vor.u32 1.1754944e-38, %v464_v26  ;;  %vm463_vm3 = vcmp.eq.f32.partialorder %v462_v27, 8.507059e+37 }
 0x772   :  { %v1845_v11 = vpop.eup %1844 }
 0x773   :  { %v454_v13 = vmul.f32 %v1845_v11, %v452_v10  ;;  %vm459_vm14 = vweird.f32 %v1845_v11 }
 0x774   :  { %vm460_vm2 = vmor %vm458_vm15, %vm459_vm14 }
 0x775   :  { %v455_v22 = vsub.f32 1.0, %v454_v13 }
 0x777   :  { %v456_v23 = vmul.f32 %v1845_v11, %v455_v22 }
 0x779   :  { %v457_v24 = vadd.f32 %v1845_v11, %v456_v23 }
 0x77b   :  { %v461_v28 = vsel %vm460_vm2, %v1845_v11, %v457_v24 }
 0x77c   :  { %v466_v31 = vsel %vm463_vm3, %v465_v29, %v461_v28 }
 0x77d   :  { %v469_v34 = vmul.f32 %v466_v31, %v2266_v12 }
 0x7c2   :  { %v472_v30 = vpop.permute.xlu2 %471 }
 0x7c3   :  { %v474_v32 = vmul.f32 %v472_v30, %v466_v31 }
 0x7c5   :  { %476 = vrot.lane.b32.xlu0 %v474_v32, %s2091_s24 }
 0x837   :  { %v477_v42 = vpop.permute.xlu0 %476 }
 0x838   :  { %v2368_v43 = vadd.f32 %v477_v42, %v469_v34 }
 0x83a   :  { %1846 = vtanh.f32 %v2368_v43 }
 0x840   :  { %v1847_v44 = vpop.eup %1846 }
 0x841   :  { %482 = vrot.lane.b32.xlu1 %v1847_v44, %s2090_s21 }
 0x8b3   :  { %v483_v46 = vpop.permute.xlu1 %482 }
 0x8b4   :  { %v485_v47 = vmul.f32 %v483_v46, %v466_v31 }
 0x8b6   :  { %487 = vrot.lane.b32.xlu2 %v485_v47, %s2091_s24 }
 0x910   :  { %v488_v49 = vpop.permute.xlu2 %487 }
 0x911   :  { %1754 = vmatmul.msk.f32.vlgmr.msra.gmra.mxu1 %vm144_vm1, %v488_v49  ;;  %1755 = vmatmul.msk.f32.vlgmr.msra.gmra.mxu2 %vm144_vm1, %v488_v49 }
 0x912   :  { %1758 = vmatmul.msk.f32.vlgmr.msrb.gmra.mxu0 %vm144_vm1, %v488_v49  ;;  %787 = vmatpush.msra.mxu1 %v2211_v35 }
 0x913   :  { %812 = vmatpush.msra.mxu2 %v2216_v37  ;;  %895 = vmatpush.msrb.mxu0 %v2270_v14 }
 0x914   :  { %788 = vmatpush.msra.mxu1 %v2213_v36 }
 0x915   :  { %813 = vmatpush.msra.mxu2 %v2221_v39  ;;  %896 = vmatpush.msrb.mxu0 %v2277_v16 }
 0x916   :  { %789 = vmatpush.msra.mxu1 %v2218_v38 }
 0x917   :  { %814 = vmatpush.msra.mxu2 %v2224_v40  ;;  %897 = vmatpush.msrb.mxu0 %v2286_v18 }
 0x918   :  { %790 = vmatpush.msra.mxu1 %v2226_v41 }
 0x919   :  { %815 = vmatpush.msra.mxu2 %v2241_v45  ;;  %898 = vmatpush.msrb.mxu0 %v2296_v20 }
 0x98f   :  { %v606_v27 = vpop.f32.mrf.mxu0 }
 0x994   :  { %v528_v12 = vpop.f32.mrf.mxu2 }
 0x995   :  { %v529_v50 = vadd.f32 %v2341_v25, %v528_v12 }
 0x997   :  { %v551_v52 = vadd.f32 %v548_v51, %v529_v50 }
 0x999   :  { %1848 = vtanh.f32 %v551_v52  ;;  %v1757_v54 = vmul.f32 -1.442695, %v551_v52 }
 0x99b   :  { %1850 = vpow2.f32 %v1757_v54 }
 0x99f   :  { %v1849_v53 = vpop.eup %1848 }
 0x9a0   :  { %574 = vrot.lane.b32.xlu0 %v1849_v53, %s2090_s21 }
 0x9a1   :  { %v1851_v55 = vpop.eup %1850 }
 0x9a2   :  { %v555_v56 = vadd.f32 1.0, %v1851_v55 }
 0x9a4   :  { %1852 = vrcp.f32 %v555_v56  ;;  %v567_v63 = vand.u32 2147483648, %v555_v56  ;;  %vm561_vm5 = vweird.f32 %v555_v56  ;;  %v565_v1 = vand.u32 2147483647, %v555_v56 }
 0x9a6   :  { %v568_v4 = vor.u32 1.1754944e-38, %v567_v63  ;;  %vm566_vm7 = vcmp.eq.f32.partialorder %v565_v1, 8.507059e+37 }
 0x9aa   :  { %v1853_v57 = vpop.eup %1852 }
 0x9ab   :  { %v557_v59 = vmul.f32 %v1853_v57, %v555_v56  ;;  %vm562_vm4 = vweird.f32 %v1853_v57 }
 0x9ac   :  { %vm563_vm6 = vmor %vm561_vm5, %vm562_vm4 }
 0x9ad   :  { %v558_v60 = vsub.f32 1.0, %v557_v59 }
 0x9af   :  { %v559_v61 = vmul.f32 %v1853_v57, %v558_v60 }
 0x9b1   :  { %v560_v62 = vadd.f32 %v1853_v57, %v559_v61 }
 0x9b3   :  { %v564_v3 = vsel %vm563_vm6, %v1853_v57, %v560_v62 }
 0x9b4   :  { %v569_v8 = vsel %vm566_vm7, %v568_v4, %v564_v3 }
 0x9b5   :  { %v572_v10 = vmul.f32 %v569_v8, %v2347_v58  ;;  %v2407_v58 = vpop.f32.mrf.mxu1 }
 0xa12   :  { %v575_v7 = vpop.permute.xlu0 %574 }
 0xa13   :  { %v577_v9 = vmul.f32 %v575_v7, %v569_v8 }
 0xa15   :  { %579 = vrot.lane.b32.xlu1 %v577_v9, %s2091_s24 }
 0xa87   :  { %v580_v11 = vpop.permute.xlu1 %579 }
 0xa88   :  { %v2392_v13 = vadd.f32 %v580_v11, %v572_v10 }
 0xa8a   :  { %1854 = vtanh.f32 %v2392_v13 }
 0xa90   :  { %v1855_v22 = vpop.eup %1854 }
 0xa91   :  { %585 = vrot.lane.b32.xlu2 %v1855_v22, %s2090_s21 }
 0xaeb   :  { %v586_v23 = vpop.permute.xlu2 %585 }
 0xaec   :  { %v588_v24 = vmul.f32 %v586_v23, %v569_v8 }
 0xaee   :  { %610 = vrot.lane.b32.xlu0 %v588_v24, %s2091_s24 }
 0xb60   :  { %v611_v26 = vpop.permute.xlu0 %610 }
 0xb61   :  { %1759 = vmatmul.msk.f32.vlgmr.msrb.gmra.mxu1 %vm144_vm1, %v611_v26  ;;  %1763 = vmatmul.msk.f32.vlgmr.msra.gmra.mxu0 %vm144_vm1, %v611_v26 }
 0xb62   :  { %915 = vmatpush.msrb.mxu1 %v2172_v0  ;;  %1061 = vmatpush.msra.mxu0 %v2275_v15 }
 0xb64   :  { %916 = vmatpush.msrb.mxu1 %v2177_v2  ;;  %1062 = vmatpush.msra.mxu0 %v2284_v17 }
 0xb66   :  { %917 = vmatpush.msrb.mxu1 %v2186_v5  ;;  %1063 = vmatpush.msra.mxu0 %v2291_v19 }
 0xb68   :  { %918 = vmatpush.msrb.mxu1 %v2190_v6  ;;  %1064 = vmatpush.msra.mxu0 %v2301_v21 }
 0xbde   :  { %v631_v28 = vpop.f32.mrf.mxu1  ;;  %v734_v4 = vpop.f32.mrf.mxu0 }
 0xbdf   :  { %v632_v29 = vadd.f32 %v631_v28, %v606_v27 }
 0xbe1   :  { %v634_v30 = vadd.f32 %v2261_v48, %v632_v29 }
 0xbe3   :  { %1856 = vtanh.f32 %v634_v30  ;;  %v1760_v32 = vmul.f32 -1.442695, %v634_v30 }
 0xbe5   :  { %1858 = vpow2.f32 %v1760_v32 }
 0xbe9   :  { %v1857_v31 = vpop.eup %1856 }
 0xbea   :  { %657 = vrot.lane.b32.xlu1 %v1857_v31, %s2090_s21 }
 0xbeb   :  { %v1859_v34 = vpop.eup %1858 }
 0xbec   :  { %v638_v42 = vadd.f32 1.0, %v1859_v34 }
 0xbee   :  { %1860 = vrcp.f32 %v638_v42  ;;  %v650_v50 = vand.u32 2147483648, %v638_v42  ;;  %vm644_vm9 = vweird.f32 %v638_v42  ;;  %v648_v51 = vand.u32 2147483647, %v638_v42 }
 0xbf0   :  { %v651_v53 = vor.u32 1.1754944e-38, %v650_v50  ;;  %vm649_vm11 = vcmp.eq.f32.partialorder %v648_v51, 8.507059e+37 }
 0xbf4   :  { %v1861_v44 = vpop.eup %1860 }
 0xbf5   :  { %v640_v46 = vmul.f32 %v1861_v44, %v638_v42  ;;  %vm645_vm8 = vweird.f32 %v1861_v44 }
 0xbf6   :  { %vm646_vm10 = vmor %vm644_vm9, %vm645_vm8 }
 0xbf7   :  { %v641_v47 = vsub.f32 1.0, %v640_v46 }
 0xbf9   :  { %v642_v49 = vmul.f32 %v1861_v44, %v641_v47 }
 0xbfb   :  { %v643_v12 = vadd.f32 %v1861_v44, %v642_v49 }
 0xbfd   :  { %v647_v52 = vsel %vm646_vm10, %v1861_v44, %v643_v12 }
 0xbfe   :  { %v652_v55 = vsel %vm649_vm11, %v651_v53, %v647_v52 }
 0xbff   :  { %v655_v57 = vmul.f32 %v652_v55, %v2368_v43 }
 0xc5c   :  { %v658_v54 = vpop.permute.xlu1 %657 }
 0xc5d   :  { %v660_v56 = vmul.f32 %v658_v54, %v652_v55 }
 0xc5f   :  { %662 = vrot.lane.b32.xlu2 %v660_v56, %s2091_s24 }
 0xcb9   :  { %v663_v59 = vpop.permute.xlu2 %662 }
 0xcba   :  { %v2413_v60 = vadd.f32 %v663_v59, %v655_v57 }
 0xcbc   :  { %1862 = vtanh.f32 %v2413_v60 }
 0xcc2   :  { %v1863_v61 = vpop.eup %1862 }
 0xcc3   :  { %668 = vrot.lane.b32.xlu0 %v1863_v61, %s2090_s21 }
 0xd35   :  { %v669_v62 = vpop.permute.xlu0 %668 }
 0xd36   :  { %v671_v63 = vmul.f32 %v669_v62, %v652_v55 }
 0xd38   :  { %673 = vrot.lane.b32.xlu1 %v671_v63, %s2091_s24 }
 0xdaa   :  { %v674_v1 = vpop.permute.xlu1 %673 }
 0xdab   :  { %1761 = vmatmul.msk.f32.vlgmr.msrb.gmra.mxu2 %vm144_vm1, %v674_v1  ;;  %1762 = vmatmul.msk.f32.vlgmr.msrb.gmra.mxu3 %vm144_vm1, %v674_v1 }
 0xdac   :  { %1765 = vmatmul.msk.f32.vlgmr.msra.gmra.mxu1 %vm144_vm1, %v674_v1  ;;  %973 = vmatpush.msrb.mxu2 %v2211_v35 }
 0xdad   :  { %998 = vmatpush.msrb.mxu3 %v2216_v37  ;;  %1081 = vmatpush.msra.mxu1 %v2270_v14 }
 0xdae   :  { %974 = vmatpush.msrb.mxu2 %v2213_v36 }
 0xdaf   :  { %999 = vmatpush.msrb.mxu3 %v2221_v39  ;;  %1082 = vmatpush.msra.mxu1 %v2277_v16 }
 0xdb0   :  { %975 = vmatpush.msrb.mxu2 %v2218_v38 }
 0xdb1   :  { %1000 = vmatpush.msrb.mxu3 %v2224_v40  ;;  %1083 = vmatpush.msra.mxu1 %v2286_v18 }
 0xdb2   :  { %976 = vmatpush.msrb.mxu2 %v2226_v41 }
 0xdb3   :  { %1001 = vmatpush.msrb.mxu3 %v2241_v45  ;;  %1084 = vmatpush.msra.mxu1 %v2296_v20 }
 0xe29   :  { %v792_v52 = vpop.f32.mrf.mxu1 }
 0xe2e   :  { %v714_v43 = vpop.f32.mrf.mxu3 }
 0xe2f   :  { %v715_v3 = vadd.f32 %v2341_v25, %v714_v43 }
 0xe31   :  { %v737_v7 = vadd.f32 %v734_v4, %v715_v3 }
 0xe33   :  { %1864 = vtanh.f32 %v737_v7  ;;  %v1764_v9 = vmul.f32 -1.442695, %v737_v7 }
 0xe35   :  { %1866 = vpow2.f32 %v1764_v9 }
 0xe39   :  { %v1865_v8 = vpop.eup %1864 }
 0xe3a   :  { %760 = vrot.lane.b32.xlu2 %v1865_v8, %s2090_s21 }
 0xe3b   :  { %v1867_v10 = vpop.eup %1866 }
 0xe3c   :  { %v741_v11 = vadd.f32 1.0, %v1867_v10 }
 0xe3e   :  { %1868 = vrcp.f32 %v741_v11  ;;  %v753_v28 = vand.u32 2147483648, %v741_v11  ;;  %vm747_vm13 = vweird.f32 %v741_v11  ;;  %v751_v29 = vand.u32 2147483647, %v741_v11 }
 0xe40   :  { %v754_v31 = vor.u32 1.1754944e-38, %v753_v28  ;;  %vm752_vm15 = vcmp.eq.f32.partialorder %v751_v29, 8.507059e+37 }
 0xe44   :  { %v1869_v22 = vpop.eup %1868 }
 0xe45   :  { %v743_v23 = vmul.f32 %v1869_v22, %v741_v11  ;;  %vm748_vm12 = vweird.f32 %v1869_v22 }
 0xe46   :  { %vm749_vm14 = vmor %vm747_vm13, %vm748_vm12 }
 0xe47   :  { %v744_v24 = vsub.f32 1.0, %v743_v23 }
 0xe49   :  { %v745_v26 = vmul.f32 %v1869_v22, %v744_v24 }
 0xe4b   :  { %v746_v27 = vadd.f32 %v1869_v22, %v745_v26 }
 0xe4d   :  { %v750_v30 = vsel %vm749_vm14, %v1869_v22, %v746_v27 }
 0xe4e   :  { %v755_v34 = vsel %vm752_vm15, %v754_v31, %v750_v30 }
 0xe4f   :  { %v758_v44 = vmul.f32 %v755_v34, %v2392_v13  ;;  %v2452_v13 = vpop.f32.mrf.mxu2 }
 0xe94   :  { %v761_v32 = vpop.permute.xlu2 %760 }
 0xe95   :  { %v763_v42 = vmul.f32 %v761_v32, %v755_v34 }
 0xe97   :  { %765 = vrot.lane.b32.xlu0 %v763_v42, %s2091_s24 }
 0xf09   :  { %v766_v46 = vpop.permute.xlu0 %765 }
 0xf0a   :  { %v2437_v47 = vadd.f32 %v766_v46, %v758_v44 }
 0xf0c   :  { %1870 = vtanh.f32 %v2437_v47 }
 0xf12   :  { %v1871_v49 = vpop.eup %1870 }
 0xf13   :  { %771 = vrot.lane.b32.xlu1 %v1871_v49, %s2090_s21 }
 0xf85   :  { %v772_v12 = vpop.permute.xlu1 %771 }
 0xf86   :  { %v774_v50 = vmul.f32 %v772_v12, %v755_v34 }
 0xf88   :  { %796 = vrot.lane.b32.xlu2 %v774_v50, %s2091_s24 }
 0xfe2   :  { %v797_v51 = vpop.permute.xlu2 %796 }
 0xfe3   :  { %1766 = vmatmul.msk.f32.vlgmr.msra.gmra.mxu2 %vm144_vm1, %v797_v51  ;;  %1770 = vmatmul.msk.f32.vlgmr.msrb.gmra.mxu1 %vm144_vm1, %v797_v51 }
 0xfe4   :  { %1101 = vmatpush.msra.mxu2 %v2172_v0  ;;  %1247 = vmatpush.msrb.mxu1 %v2275_v15 }
 0xfe6   :  { %1102 = vmatpush.msra.mxu2 %v2177_v2  ;;  %1248 = vmatpush.msrb.mxu1 %v2284_v17 }
 0xfe8   :  { %1103 = vmatpush.msra.mxu2 %v2186_v5  ;;  %1249 = vmatpush.msrb.mxu1 %v2291_v19 }
 0xfea   :  { %1104 = vmatpush.msra.mxu2 %v2190_v6  ;;  %1250 = vmatpush.msrb.mxu1 %v2301_v21 }
0x1066   :  { %v817_v53 = vpop.f32.mrf.mxu2 }
0x1067   :  { %v818_v54 = vadd.f32 %v817_v53, %v792_v52 }
0x1069   :  { %v820_v0 = vadd.f32 %v2261_v48, %v818_v54 }
0x106b   :  { %1872 = vtanh.f32 %v820_v0  ;;  %v1767_v2 = vmul.f32 -1.442695, %v820_v0 }
0x106d   :  { %1874 = vpow2.f32 %v1767_v2  ;;  %v2497_v2 = vld [vmem:[#allocation5 + $0x8] sm:$0xff] }
0x1071   :  { %v1873_v55 = vpop.eup %1872 }
0x1072   :  { %843 = vrot.lane.b32.xlu0 %v1873_v55, %s2090_s21  ;;  %v2489_v55 = vld [vmem:[#allocation5 + $0x18] sm:$0xff] }
0x1073   :  { %v1875_v5 = vpop.eup %1874 }
0x1074   :  { %v824_v56 = vadd.f32 1.0, %v1875_v5  ;;  %v2501_v5 = vld [vmem:[#allocation5] sm:$0xff] }
0x1076   :  { %1876 = vrcp.f32 %v824_v56  ;;  %v836_v63 = vand.u32 2147483648, %v824_v56  ;;  %vm830_vm3 = vweird.f32 %v824_v56  ;;  %v834_v1 = vand.u32 2147483647, %v824_v56 }
0x1078   :  { %v837_v3 = vor.u32 1.1754944e-38, %v836_v63  ;;  %vm835_vm5 = vcmp.eq.f32.partialorder %v834_v1, 8.507059e+37 }
0x107c   :  { %v1877_v57 = vpop.eup %1876 }
0x107d   :  { %v826_v6 = vmul.f32 %v1877_v57, %v824_v56  ;;  %vm831_vm2 = vweird.f32 %v1877_v57 }
0x107e   :  { %vm832_vm4 = vmor %vm830_vm3, %vm831_vm2 }
0x107f   :  { %v827_v59 = vsub.f32 1.0, %v826_v6 }
0x1081   :  { %v828_v61 = vmul.f32 %v1877_v57, %v827_v59 }
0x1083   :  { %v829_v62 = vadd.f32 %v1877_v57, %v828_v61 }
0x1085   :  { %v833_v43 = vsel %vm832_vm4, %v1877_v57, %v829_v62 }
0x1086   :  { %v838_v7 = vsel %vm835_vm5, %v837_v3, %v833_v43 }
0x1087   :  { %v841_v9 = vmul.f32 %v838_v7, %v2413_v60 }
0x10e4   :  { %v844_v4 = vpop.permute.xlu0 %843 }
0x10e5   :  { %v846_v8 = vmul.f32 %v844_v4, %v838_v7 }
0x10e7   :  { %848 = vrot.lane.b32.xlu1 %v846_v8, %s2091_s24 }
0x1159   :  { %v849_v10 = vpop.permute.xlu1 %848 }
0x115a   :  { %v2458_v11 = vadd.f32 %v849_v10, %v841_v9 }
0x115c   :  { %1878 = vtanh.f32 %v2458_v11 }
0x1162   :  { %v1879_v22 = vpop.eup %1878 }
0x1163   :  { %854 = vrot.lane.b32.xlu2 %v1879_v22, %s2090_s21 }
0x11bd   :  { %v855_v23 = vpop.permute.xlu2 %854 }
0x11be   :  { %v857_v24 = vmul.f32 %v855_v23, %v838_v7 }
0x11c0   :  { %859 = vrot.lane.b32.xlu0 %v857_v24, %s2091_s24 }
0x1232   :  { %v860_v26 = vpop.permute.xlu0 %859 }
0x1233   :  { %1768 = vmatmul.msk.f32.vlgmr.msra.gmra.mxu3 %vm144_vm1, %v860_v26  ;;  %1769 = vmatmul.msk.f32.vlgmr.msrb.gmra.mxu0 %vm144_vm1, %v860_v26 }
0x1234   :  { %1772 = vmatmul.msk.f32.vlgmr.msrb.gmra.mxu2 %vm144_vm1, %v860_v26  ;;  %1159 = vmatpush.msra.mxu3 %v2211_v35 }
0x1235   :  { %1184 = vmatpush.msrb.mxu0 %v2216_v37  ;;  %1267 = vmatpush.msrb.mxu2 %v2270_v14 }
0x1236   :  { %1160 = vmatpush.msra.mxu3 %v2213_v36  ;;  %v920_v36 = vpop.f32.mrf.mxu1 }
0x1237   :  { %1185 = vmatpush.msrb.mxu0 %v2221_v39  ;;  %1268 = vmatpush.msrb.mxu2 %v2277_v16 }
0x1238   :  { %1161 = vmatpush.msra.mxu3 %v2218_v38 }
0x1239   :  { %1186 = vmatpush.msrb.mxu0 %v2224_v40  ;;  %1269 = vmatpush.msrb.mxu2 %v2286_v18 }
0x123a   :  { %1162 = vmatpush.msra.mxu3 %v2226_v41 }
0x123b   :  { %1187 = vmatpush.msrb.mxu0 %v2241_v45  ;;  %1270 = vmatpush.msrb.mxu2 %v2296_v20 }
0x12b0   :  { %v900_v35 = vpop.f32.mrf.mxu0 }
0x12b1   :  { %v901_v37 = vadd.f32 %v2341_v25, %v900_v35 }
0x12b3   :  { %v923_v60 = vadd.f32 %v920_v36, %v901_v37 }
0x12b5   :  { %1880 = vtanh.f32 %v923_v60  ;;  %v1771_v38 = vmul.f32 -1.442695, %v923_v60 }
0x12b6   :  { %v2505_v56 = vpop.f32.mrf.mxu3 }
0x12b7   :  { %1882 = vpow2.f32 %v1771_v38  ;;  %v978_v57 = vpop.f32.mrf.mxu2 }
0x12bb   :  { %v1881_v39 = vpop.eup %1880 }
0x12bc   :  { %946 = vrot.lane.b32.xlu1 %v1881_v39, %s2090_s21 }
0x12bd   :  { %v1883_v40 = vpop.eup %1882 }
0x12be   :  { %v927_v27 = vadd.f32 1.0, %v1883_v40 }
0x12c0   :  { %1884 = vrcp.f32 %v927_v27  ;;  %v939_v31 = vand.u32 2147483648, %v927_v27  ;;  %vm933_vm7 = vweird.f32 %v927_v27  ;;  %v937_v32 = vand.u32 2147483647, %v927_v27 }
0x12c2   :  { %v940_v42 = vor.u32 1.1754944e-38, %v939_v31  ;;  %vm938_vm9 = vcmp.eq.f32.partialorder %v937_v32, 8.507059e+37  ;;  %v2543_v31 = vld [vmem:[#allocation2 + $0x20] sm:$0xff] }
0x12c6   :  { %v1885_v28 = vpop.eup %1884 }
0x12c7   :  { %v929_v41 = vmul.f32 %v1885_v28, %v927_v27  ;;  %vm934_vm6 = vweird.f32 %v1885_v28 }
0x12c8   :  { %vm935_vm8 = vmor %vm933_vm7, %vm934_vm6 }
0x12c9   :  { %v930_v29 = vsub.f32 1.0, %v929_v41  ;;  %v2526_v41 = vld [vmem:[#allocation5 + $0x30] sm:$0xff] }
0x12cb   :  { %v931_v45 = vmul.f32 %v1885_v28, %v930_v29  ;;  %v2529_v29 = vld [vmem:[#allocation2 + $0x30] sm:$0xff] }
0x12cd   :  { %v932_v30 = vadd.f32 %v1885_v28, %v931_v45  ;;  %v2533_v45 = vld [vmem:[#allocation5 + $0x28] sm:$0xff] }
0x12cf   :  { %v936_v34 = vsel %vm935_vm8, %v1885_v28, %v932_v30  ;;  %v2522_v28 = vld [vmem:[#allocation2 + $0x38] sm:$0xff]  ;;  %v2536_v30 = vld [vmem:[#allocation2 + $0x28] sm:$0xff] }
0x12d0   :  { %v941_v46 = vsel %vm938_vm9, %v940_v42, %v936_v34 }
0x12d1   :  { %v944_v12 = vmul.f32 %v941_v46, %v2437_v47  ;;  %v2493_v47 = vld [vmem:[#allocation5 + $0x10] sm:$0xff] }
0x132e   :  { %v947_v44 = vpop.permute.xlu1 %946 }
0x132f   :  { %v949_v49 = vmul.f32 %v947_v44, %v941_v46 }
0x1331   :  { %951 = vrot.lane.b32.xlu2 %v949_v49, %s2091_s24 }
0x138b   :  { %v952_v50 = vpop.permute.xlu2 %951 }
0x138c   :  { %v2482_v51 = vadd.f32 %v952_v50, %v944_v12 }
0x138e   :  { %1886 = vtanh.f32 %v2482_v51 }
0x1394   :  { %v1887_v52 = vpop.eup %1886 }
0x1395   :  { %957 = vrot.lane.b32.xlu0 %v1887_v52, %s2090_s21 }
0x1407   :  { %v958_v53 = vpop.permute.xlu0 %957 }
0x1408   :  { %v960_v54 = vmul.f32 %v958_v53, %v941_v46 }
0x140a   :  { %982 = vrot.lane.b32.xlu1 %v960_v54, %s2091_s24 }
0x147c   :  { %v983_v0 = vpop.permute.xlu1 %982 }
0x147d   :  { %1773 = vmatmul.msk.f32.vlgmr.msrb.gmra.mxu3 %vm144_vm1, %v983_v0  ;;  %1777 = vmatmul.msk.f32.vlgmr.msra.gmra.mxu2 %vm144_vm1, %v983_v0 }
0x147e   :  { %1287 = vmatpush.msrb.mxu3 %v2489_v55  ;;  %1433 = vmatpush.msra.mxu2 %v2275_v15 }
0x1480   :  { %1288 = vmatpush.msrb.mxu3 %v2493_v47  ;;  %1434 = vmatpush.msra.mxu2 %v2284_v17 }
0x1482   :  { %1289 = vmatpush.msrb.mxu3 %v2497_v2  ;;  %1435 = vmatpush.msra.mxu2 %v2291_v19 }
0x1484   :  { %1290 = vmatpush.msrb.mxu3 %v2501_v5  ;;  %1436 = vmatpush.msra.mxu2 %v2301_v21 }
0x1500   :  { %v1003_v6 = vpop.f32.mrf.mxu3  ;;  %v1106_v34 = vpop.f32.mrf.mxu2 }
0x1501   :  { %v1004_v59 = vadd.f32 %v1003_v6, %v978_v57 }
0x1503   :  { %v1006_v61 = vadd.f32 %v2261_v48, %v1004_v59 }
0x1505   :  { %1888 = vtanh.f32 %v1006_v61  ;;  %v1774_v63 = vmul.f32 -1.442695, %v1006_v61 }
0x1507   :  { %1890 = vpow2.f32 %v1774_v63 }
0x150b   :  { %v1889_v62 = vpop.eup %1888 }
0x150c   :  { %1029 = vrot.lane.b32.xlu2 %v1889_v62, %s2090_s21 }
0x150d   :  { %v1891_v1 = vpop.eup %1890 }
0x150e   :  { %v1010_v43 = vadd.f32 1.0, %v1891_v1 }
0x1510   :  { %1892 = vrcp.f32 %v1010_v43  ;;  %v1022_v10 = vand.u32 2147483648, %v1010_v43  ;;  %vm1016_vm11 = vweird.f32 %v1010_v43  ;;  %v1020_v22 = vand.u32 2147483647, %v1010_v43 }
0x1512   :  { %v1023_v23 = vor.u32 1.1754944e-38, %v1022_v10  ;;  %vm1021_vm13 = vcmp.eq.f32.partialorder %v1020_v22, 8.507059e+37 }
0x1516   :  { %v1893_v3 = vpop.eup %1892 }
0x1517   :  { %v1012_v4 = vmul.f32 %v1893_v3, %v1010_v43  ;;  %vm1017_vm10 = vweird.f32 %v1893_v3 }
0x1518   :  { %vm1018_vm12 = vmor %vm1016_vm11, %vm1017_vm10 }
0x1519   :  { %v1013_v7 = vsub.f32 1.0, %v1012_v4 }
0x151b   :  { %v1014_v8 = vmul.f32 %v1893_v3, %v1013_v7 }
0x151d   :  { %v1015_v9 = vadd.f32 %v1893_v3, %v1014_v8 }
0x151f   :  { %v1019_v48 = vsel %vm1018_vm12, %v1893_v3, %v1015_v9 }
0x1520   :  { %v1024_v26 = vsel %vm1021_vm13, %v1023_v23, %v1019_v48 }
0x1521   :  { %v1027_v37 = vmul.f32 %v1024_v26, %v2458_v11  ;;  %v2519_v11 = vld [vmem:[#allocation5 + $0x38] sm:$0xff] }
0x1566   :  { %v1030_v24 = vpop.permute.xlu2 %1029 }
0x1567   :  { %v1032_v35 = vmul.f32 %v1030_v24, %v1024_v26 }
0x1569   :  { %1034 = vrot.lane.b32.xlu0 %v1032_v35, %s2091_s24 }
0x15db   :  { %v1035_v36 = vpop.permute.xlu0 %1034 }
0x15dc   :  { %v2511_v60 = vadd.f32 %v1035_v36, %v1027_v37 }
0x15de   :  { %1894 = vtanh.f32 %v2511_v60 }
0x15e4   :  { %v1895_v39 = vpop.eup %1894 }
0x15e5   :  { %1040 = vrot.lane.b32.xlu1 %v1895_v39, %s2090_s21 }
0x1657   :  { %v1041_v38 = vpop.permute.xlu1 %1040 }
0x1658   :  { %v1043_v40 = vmul.f32 %v1041_v38, %v1024_v26 }
0x165a   :  { %1045 = vrot.lane.b32.xlu2 %v1043_v40, %s2091_s24 }
0x16b4   :  { %v1046_v27 = vpop.permute.xlu2 %1045 }
0x16b5   :  { %1775 = vmatmul.msk.f32.vlgmr.msra.gmra.mxu0 %vm144_vm1, %v1046_v27  ;;  %1776 = vmatmul.msk.f32.vlgmr.msra.gmra.mxu1 %vm144_vm1, %v1046_v27 }
0x16b6   :  { %1779 = vmatmul.msk.f32.vlgmr.msra.gmra.mxu3 %vm144_vm1, %v1046_v27  ;;  %1345 = vmatpush.msra.mxu0 %v2519_v11 }
0x16b7   :  { %1370 = vmatpush.msra.mxu1 %v2522_v28  ;;  %1453 = vmatpush.msra.mxu3 %v2270_v14  ;;  %v2540_v14 = vld [vmem:[#allocation5 + $0x20] sm:$0xff] }
0x16b8   :  { %1346 = vmatpush.msra.mxu0 %v2526_v41 }
0x16b9   :  { %1371 = vmatpush.msra.mxu1 %v2529_v29  ;;  %1454 = vmatpush.msra.mxu3 %v2277_v16 }
0x16ba   :  { %1347 = vmatpush.msra.mxu0 %v2533_v45 }
0x16bb   :  { %1372 = vmatpush.msra.mxu1 %v2536_v30  ;;  %1455 = vmatpush.msra.mxu3 %v2286_v18 }
0x16bc   :  { %1348 = vmatpush.msra.mxu0 %v2540_v14 }
0x16bd   :  { %1373 = vmatpush.msra.mxu1 %v2543_v31  ;;  %1456 = vmatpush.msra.mxu3 %v2296_v20 }
0x1732   :  { %v1086_v16 = vpop.f32.mrf.mxu1 }
0x1733   :  { %v1087_v32 = vadd.f32 %v2341_v25, %v1086_v16 }
0x1735   :  { %v1109_v42 = vadd.f32 %v1106_v34, %v1087_v32 }
0x1737   :  { %1896 = vtanh.f32 %v1109_v42  ;;  %v1778_v18 = vmul.f32 -1.442695, %v1109_v42 }
0x1739   :  { %1898 = vpow2.f32 %v1778_v18  ;;  %v1164_v8 = vpop.f32.mrf.mxu3  ;;  %v2596_v18 = vld [vmem:[%s2684_s7] ss:$0 sm:$0xff] }
0x173d   :  { %v1897_v44 = vpop.eup %1896 }
0x173e   :  { %1132 = vrot.lane.b32.xlu0 %v1897_v44, %s2090_s21 }
0x173f   :  { %v1899_v46 = vpop.eup %1898 }
0x1740   :  { %v1113_v49 = vadd.f32 1.0, %v1899_v46 }
0x1742   :  { %1900 = vrcp.f32 %v1113_v49  ;;  %v1125_v20 = vand.u32 2147483648, %v1113_v49  ;;  %vm1119_vm15 = vweird.f32 %v1113_v49  ;;  %v1123_v25 = vand.u32 2147483647, %v1113_v49 }
0x1744   :  { %v1126_v57 = vor.u32 1.1754944e-38, %v1125_v20  ;;  %vm1124_vm3 = vcmp.eq.f32.partialorder %v1123_v25, 8.507059e+37 }
0x1748   :  { %v1901_v12 = vpop.eup %1900 }
0x1749   :  { %v1115_v50 = vmul.f32 %v1901_v12, %v1113_v49  ;;  %vm1120_vm14 = vweird.f32 %v1901_v12 }
0x174a   :  { %vm1121_vm2 = vmor %vm1119_vm15, %vm1120_vm14 }
0x174b   :  { %v1116_v52 = vsub.f32 1.0, %v1115_v50 }
0x174d   :  { %v1117_v53 = vmul.f32 %v1901_v12, %v1116_v52 }
0x174f   :  { %v1118_v54 = vadd.f32 %v1901_v12, %v1117_v53 }
0x1751   :  { %v1122_v0 = vsel %vm1121_vm2, %v1901_v12, %v1118_v54 }
0x1752   :  { %v1127_v59 = vsel %vm1124_vm3, %v1126_v57, %v1122_v0 }
0x1753   :  { %v1130_v62 = vmul.f32 %v1127_v59, %v2482_v51  ;;  %v2566_v51 = vpop.f32.mrf.mxu0 }
0x17b0   :  { %v1133_v6 = vpop.permute.xlu0 %1132 }
0x17b1   :  { %v1135_v61 = vmul.f32 %v1133_v6, %v1127_v59 }
0x17b3   :  { %1137 = vrot.lane.b32.xlu1 %v1135_v61, %s2091_s24 }
0x1825   :  { %v1138_v63 = vpop.permute.xlu1 %1137 }
0x1826   :  { %v2551_v1 = vadd.f32 %v1138_v63, %v1130_v62 }
0x1828   :  { %1902 = vtanh.f32 %v2551_v1 }
0x182e   :  { %v1903_v43 = vpop.eup %1902 }
0x182f   :  { %1143 = vrot.lane.b32.xlu2 %v1903_v43, %s2090_s21 }
0x1889   :  { %v1144_v3 = vpop.permute.xlu2 %1143 }
0x188a   :  { %v1146_v4 = vmul.f32 %v1144_v3, %v1127_v59 }
0x188c   :  { %1168 = vrot.lane.b32.xlu0 %v1146_v4, %s2091_s24 }
0x18fe   :  { %v1169_v7 = vpop.permute.xlu0 %1168 }
0x18ff   :  { %1780 = vmatmul.msk.f32.vlgmr.msrb.gmra.mxu0 %vm144_vm1, %v1169_v7  ;;  %1784 = vmatmul.msk.f32.vlgmr.msrb.gmra.mxu3 %vm144_vm1, %v1169_v7 }
0x1900   :  { %1473 = vmatpush.msrb.mxu0 %v2489_v55  ;;  %1619 = vmatpush.msrb.mxu3 %v2275_v15  ;;  %v2571_v15 = vld [vmem:[%s2684_s7 + $0x1] ss:$0 sm:$0xff] }
0x1902   :  { %1474 = vmatpush.msrb.mxu0 %v2493_v47  ;;  %1620 = vmatpush.msrb.mxu3 %v2284_v17 }
0x1904   :  { %1475 = vmatpush.msrb.mxu0 %v2497_v2  ;;  %1621 = vmatpush.msrb.mxu3 %v2291_v19 }
0x1906   :  { %1476 = vmatpush.msrb.mxu0 %v2501_v5  ;;  %1622 = vmatpush.msrb.mxu3 %v2301_v21 }
0x197c   :  { %v1189_v9 = vpop.f32.mrf.mxu0 }
0x197d   :  { %v1190_v10 = vadd.f32 %v1189_v9, %v1164_v8 }
0x197f   :  { %v1192_v17 = vadd.f32 %v2571_v15, %v1190_v10 }
0x1981   :  { %1904 = vtanh.f32 %v1192_v17  ;;  %v1781_v19 = vmul.f32 -1.442695, %v1192_v17 }
0x1983   :  { %1906 = vpow2.f32 %v1781_v19 }
0x1987   :  { %v1905_v55 = vpop.eup %1904 }
0x1988   :  { %1215 = vrot.lane.b32.xlu1 %v1905_v55, %s2090_s21 }
0x1989   :  { %v1907_v47 = vpop.eup %1906 }
0x198a   :  { %v1196_v21 = vadd.f32 1.0, %v1907_v47 }
0x198c   :  { %1908 = vrcp.f32 %v1196_v21  ;;  %v1208_v24 = vand.u32 2147483648, %v1196_v21  ;;  %vm1202_vm5 = vweird.f32 %v1196_v21  ;;  %v1206_v26 = vand.u32 2147483647, %v1196_v21 }
0x198e   :  { %v1209_v37 = vor.u32 1.1754944e-38, %v1208_v24  ;;  %vm1207_vm7 = vcmp.eq.f32.partialorder %v1206_v26, 8.507059e+37 }
0x1992   :  { %v1909_v2 = vpop.eup %1908 }
0x1993   :  { %v1198_v5 = vmul.f32 %v1909_v2, %v1196_v21  ;;  %vm1203_vm4 = vweird.f32 %v1909_v2 }
0x1994   :  { %vm1204_vm6 = vmor %vm1202_vm5, %vm1203_vm4 }
0x1995   :  { %v1199_v22 = vsub.f32 1.0, %v1198_v5 }
0x1997   :  { %v1200_v48 = vmul.f32 %v1909_v2, %v1199_v22 }
0x1999   :  { %v1201_v23 = vadd.f32 %v1909_v2, %v1200_v48 }
0x199b   :  { %v1205_v35 = vsel %vm1204_vm6, %v1909_v2, %v1201_v23  ;;  %vm1669_vm6 = vcmask 257024  }
0x199c   :  { %v1210_v39 = vsel %vm1207_vm7, %v1209_v37, %v1205_v35 }
0x199d   :  { %v1213_v40 = vmul.f32 %v1210_v39, %v2511_v60 }
0x19fa   :  { %v1216_v36 = vpop.permute.xlu1 %1215 }
0x19fb   :  { %v1218_v38 = vmul.f32 %v1216_v36, %v1210_v39 }
0x19fd   :  { %1220 = vrot.lane.b32.xlu2 %v1218_v38, %s2091_s24 }
0x1a57   :  { %v1221_v27 = vpop.permute.xlu2 %1220 }
0x1a58   :  { %v2577_v16 = vadd.f32 %v1221_v27, %v1213_v40 }
0x1a5a   :  { %1910 = vtanh.f32 %v2577_v16 }
0x1a60   :  { %v1911_v32 = vpop.eup %1910 }
0x1a61   :  { %1226 = vrot.lane.b32.xlu0 %v1911_v32, %s2090_s21 }
0x1ad3   :  { %v1227_v34 = vpop.permute.xlu0 %1226 }
0x1ad4   :  { %v1229_v42 = vmul.f32 %v1227_v34, %v1210_v39 }
0x1ad6   :  { %1231 = vrot.lane.b32.xlu1 %v1229_v42, %s2091_s24 }
0x1b48   :  { %v1232_v44 = vpop.permute.xlu1 %1231 }
0x1b49   :  { %1782 = vmatmul.msk.f32.vlgmr.msrb.gmra.mxu1 %vm144_vm1, %v1232_v44  ;;  %1783 = vmatmul.msk.f32.vlgmr.msrb.gmra.mxu2 %vm144_vm1, %v1232_v44 }
0x1b4a   :  { %1786 = vmatmul.msk.f32.vlgmr.msra.gmra.mxu0 %vm144_vm1, %v1232_v44  ;;  %1531 = vmatpush.msrb.mxu1 %v2519_v11 }
0x1b4b   :  { %1556 = vmatpush.msrb.mxu2 %v2522_v28  ;;  %v1292_v28 = vpop.f32.mrf.mxu3 }
0x1b4c   :  { %1532 = vmatpush.msrb.mxu1 %v2526_v41 }
0x1b4d   :  { %1557 = vmatpush.msrb.mxu2 %v2529_v29 }
0x1b4e   :  { %1533 = vmatpush.msrb.mxu1 %v2533_v45 }
0x1b4f   :  { %1558 = vmatpush.msrb.mxu2 %v2536_v30 }
0x1b50   :  { %1534 = vmatpush.msrb.mxu1 %v2540_v14 }
0x1b51   :  { %1559 = vmatpush.msrb.mxu2 %v2543_v31 }
0x1bc6   :  { %v2609_v4 = vpop.f32.mrf.mxu1 }
0x1bcc   :  { %v1272_v60 = vpop.f32.mrf.mxu2 }
0x1bcd   :  { %v1273_v11 = vadd.f32 %v2596_v18, %v1272_v60 }
0x1bcf   :  { %v1295_v41 = vadd.f32 %v1292_v28, %v1273_v11 }
0x1bd1   :  { %1912 = vtanh.f32 %v1295_v41  ;;  %v1785_v45 = vmul.f32 -1.442695, %v1295_v41 }
0x1bd3   :  { %1914 = vpow2.f32 %v1785_v45 }
0x1bd7   :  { %v1913_v29 = vpop.eup %1912 }
0x1bd8   :  { %1318 = vrot.lane.b32.xlu2 %v1913_v29, %s2090_s21 }
0x1bd9   :  { %v1915_v30 = vpop.eup %1914 }
0x1bda   :  { %v1299_v14 = vadd.f32 1.0, %v1915_v30 }
0x1bdc   :  { %1916 = vrcp.f32 %v1299_v14  ;;  %v1311_v52 = vand.u32 2147483648, %v1299_v14  ;;  %vm1305_vm9 = vweird.f32 %v1299_v14  ;;  %v1309_v53 = vand.u32 2147483647, %v1299_v14 }
0x1bde   :  { %v1312_v20 = vor.u32 1.1754944e-38, %v1311_v52  ;;  %vm1310_vm11 = vcmp.eq.f32.partialorder %v1309_v53, 8.507059e+37 }
0x1be2   :  { %v1917_v31 = vpop.eup %1916 }
0x1be3   :  { %v1301_v46 = vmul.f32 %v1917_v31, %v1299_v14  ;;  %vm1306_vm8 = vweird.f32 %v1917_v31 }
0x1be4   :  { %vm1307_vm10 = vmor %vm1305_vm9, %vm1306_vm8 }
0x1be5   :  { %v1302_v49 = vsub.f32 1.0, %v1301_v46 }
0x1be7   :  { %v1303_v12 = vmul.f32 %v1917_v31, %v1302_v49 }
0x1be9   :  { %v1304_v50 = vadd.f32 %v1917_v31, %v1303_v12 }
0x1beb   :  { %v1308_v54 = vsel %vm1307_vm10, %v1917_v31, %v1304_v50 }
0x1bec   :  { %v1313_v0 = vsel %vm1310_vm11, %v1312_v20, %v1308_v54  ;;  %vm1657_vm11 = vcmask 392192  }
0x1bed   :  { %v1316_v6 = vmul.f32 %v1313_v0, %v2551_v1  ;;  %v1350_v1 = vpop.f32.mrf.mxu0 }
0x1c32   :  { %v1319_v25 = vpop.permute.xlu2 %1318 }
0x1c33   :  { %v1321_v57 = vmul.f32 %v1319_v25, %v1313_v0 }
0x1c35   :  { %1323 = vrot.lane.b32.xlu0 %v1321_v57, %s2091_s24 }
0x1ca7   :  { %v1324_v59 = vpop.permute.xlu0 %1323 }
0x1ca8   :  { %v2602_v61 = vadd.f32 %v1324_v59, %v1316_v6 }
0x1caa   :  { %1918 = vtanh.f32 %v2602_v61 }
0x1cb0   :  { %v1919_v62 = vpop.eup %1918 }
0x1cb1   :  { %1329 = vrot.lane.b32.xlu1 %v1919_v62, %s2090_s21 }
0x1d23   :  { %v1330_v63 = vpop.permute.xlu1 %1329 }
0x1d24   :  { %v1332_v43 = vmul.f32 %v1330_v63, %v1313_v0 }
0x1d26   :  { %1354 = vrot.lane.b32.xlu2 %v1332_v43, %s2091_s24 }
0x1d80   :  { %v1355_v3 = vpop.permute.xlu2 %1354 }
0x1d81   :  { %1787 = vmatmul.msk.f32.vlgmr.msra.gmra.mxu1 %vm144_vm1, %v1355_v3  ;;  %1791 = vmatmul.msk.f32.vlgmr.msrb.gmra.mxu0 %vm144_vm1, %v1355_v3 }
0x1dfe   :  { %v1375_v7 = vpop.f32.mrf.mxu1  ;;  %v1478_v60 = vpop.f32.mrf.mxu0 }
0x1dff   :  { %v1376_v8 = vadd.f32 %v1375_v7, %v1350_v1 }
0x1e01   :  { %v1378_v9 = vadd.f32 %v2571_v15, %v1376_v8 }
0x1e03   :  { %1920 = vtanh.f32 %v1378_v9  ;;  %v1788_v17 = vmul.f32 -1.442695, %v1378_v9 }
0x1e05   :  { %1922 = vpow2.f32 %v1788_v17 }
0x1e09   :  { %v1921_v10 = vpop.eup %1920 }
0x1e0a   :  { %1401 = vrot.lane.b32.xlu0 %v1921_v10, %s2090_s21 }
0x1e0b   :  { %v1923_v55 = vpop.eup %1922 }
0x1e0c   :  { %v1382_v19 = vadd.f32 1.0, %v1923_v55 }
0x1e0e   :  { %1924 = vrcp.f32 %v1382_v19  ;;  %v1394_v48 = vand.u32 2147483648, %v1382_v19  ;;  %vm1388_vm13 = vweird.f32 %v1382_v19  ;;  %v1392_v23 = vand.u32 2147483647, %v1382_v19 }
0x1e10   :  { %v1395_v26 = vor.u32 1.1754944e-38, %v1394_v48  ;;  %vm1393_vm15 = vcmp.eq.f32.partialorder %v1392_v23, 8.507059e+37 }
0x1e14   :  { %v1925_v47 = vpop.eup %1924 }
0x1e15   :  { %v1384_v21 = vmul.f32 %v1925_v47, %v1382_v19  ;;  %vm1389_vm12 = vweird.f32 %v1925_v47 }
0x1e16   :  { %vm1390_vm14 = vmor %vm1388_vm13, %vm1389_vm12  ;;  %vm1659_vm12 = vcmask 523264   ;;  %vm1661_vm13 = vcmask 654336  }
0x1e17   :  { %v1385_v2 = vsub.f32 1.0, %v1384_v21 }
0x1e19   :  { %v1386_v5 = vmul.f32 %v1925_v47, %v1385_v2 }
0x1e1b   :  { %v1387_v22 = vadd.f32 %v1925_v47, %v1386_v5 }
0x1e1d   :  { %v1391_v24 = vsel %vm1390_vm14, %v1925_v47, %v1387_v22  ;;  %vm1663_vm14 = vcmask 785408  }
0x1e1e   :  { %v1396_v37 = vsel %vm1393_vm15, %v1395_v26, %v1391_v24 }
0x1e1f   :  { %v1399_v39 = vmul.f32 %v1396_v37, %v2577_v16 }
0x1e7c   :  { %v1402_v35 = vpop.permute.xlu0 %1401 }
0x1e7d   :  { %v1404_v36 = vmul.f32 %v1402_v35, %v1396_v37  ;;  %v2637_v35 = vld [vmem:[%s2686_s9] ss:$0 sm:$0xff]  ;;  %s2093_s9 = smov 80  }
0x1e7f   :  { %1406 = vrot.lane.b32.xlu1 %v1404_v36, %s2091_s24  ;;  %v1067_v36 = vadd.f32 %v2637_v35, %v2566_v51 }
0x1ef1   :  { %v1407_v38 = vpop.permute.xlu1 %1406 }
0x1ef2   :  { %v2615_v40 = vadd.f32 %v1407_v38, %v1399_v39 }
0x1ef4   :  { %1926 = vtanh.f32 %v2615_v40 }
0x1efa   :  { %v1927_v27 = vpop.eup %1926 }
0x1efb   :  { %1412 = vrot.lane.b32.xlu2 %v1927_v27, %s2090_s21 }
0x1f55   :  { %v1413_v32 = vpop.permute.xlu2 %1412 }
0x1f56   :  { %v1415_v34 = vmul.f32 %v1413_v32, %v1396_v37  ;;  %v509_v37 = vadd.f32 %v2637_v35, %v2407_v58  ;;  %v1253_v58 = vadd.f32 %v2637_v35, %v2609_v4 }
0x1f58   :  { %1417 = vrot.lane.b32.xlu0 %v1415_v34, %s2091_s24  ;;  %v695_v34 = vadd.f32 %v2637_v35, %v2452_v13 }
0x1fca   :  { %v1418_v42 = vpop.permute.xlu0 %1417 }
0x1fcb   :  { %1789 = vmatmul.msk.f32.vlgmr.msra.gmra.mxu2 %vm144_vm1, %v1418_v42  ;;  %1790 = vmatmul.msk.f32.vlgmr.msra.gmra.mxu3 %vm144_vm1, %v1418_v42 }
0x1fcc   :  { %1793 = vmatmul.msk.f32.vlgmr.msrb.gmra.mxu1 %vm144_vm1, %v1418_v42 }
0x2049   :  { %v1536_v3 = vpop.f32.mrf.mxu1 }
0x204e   :  { %v1458_v16 = vpop.f32.mrf.mxu3  ;;  %v1438_v43 = vpop.f32.mrf.mxu2 }
0x204f   :  { %v1459_v44 = vadd.f32 %v2596_v18, %v1458_v16  ;;  %v881_v16 = vadd.f32 %v2637_v35, %v2505_v56 }
0x2051   :  { %v1481_v11 = vadd.f32 %v1478_v60, %v1459_v44  ;;  %v1439_v44 = vadd.f32 %v2637_v35, %v1438_v43 }
0x2053   :  { %1928 = vtanh.f32 %v1481_v11  ;;  %v1792_v41 = vmul.f32 -1.442695, %v1481_v11 }
0x2055   :  { %1930 = vpow2.f32 %v1792_v41 }
0x2059   :  { %v1929_v28 = vpop.eup %1928 }
0x205a   :  { %1504 = vrot.lane.b32.xlu1 %v1929_v28, %s2090_s21  ;;  %v323_v28 = vadd.f32 %v2637_v35, %v2362_v33 }
0x205b   :  { %v1931_v29 = vpop.eup %1930 }
0x205c   :  { %v1485_v45 = vadd.f32 1.0, %v1931_v29 }
0x205e   :  { %1932 = vrcp.f32 %v1485_v45  ;;  %v1497_v12 = vand.u32 2147483648, %v1485_v45  ;;  %vm1491_vm3 = vweird.f32 %v1485_v45  ;;  %v1495_v18 = vand.u32 2147483647, %v1485_v45 }
0x2060   :  { %v1498_v52 = vor.u32 1.1754944e-38, %v1497_v12  ;;  %vm1496_vm5 = vcmp.eq.f32.partialorder %v1495_v18, 8.507059e+37 }
0x2064   :  { %v1933_v30 = vpop.eup %1932 }
0x2065   :  { %v1487_v14 = vmul.f32 %v1933_v30, %v1485_v45  ;;  %vm1492_vm2 = vweird.f32 %v1933_v30 }
0x2066   :  { %vm1493_vm4 = vmor %vm1491_vm3, %vm1492_vm2 }
0x2067   :  { %v1488_v31 = vsub.f32 1.0, %v1487_v14 }
0x2069   :  { %v1489_v46 = vmul.f32 %v1933_v30, %v1488_v31 }
0x206b   :  { %v1490_v49 = vadd.f32 %v1933_v30, %v1489_v46 }
0x206d   :  { %v1494_v50 = vsel %vm1493_vm4, %v1933_v30, %v1490_v49 }
0x206e   :  { %v1499_v54 = vsel %vm1496_vm5, %v1498_v52, %v1494_v50 }
0x206f   :  { %v1502_v25 = vmul.f32 %v1499_v54, %v2602_v61 }
0x20cc   :  { %v1505_v53 = vpop.permute.xlu1 %1504 }
0x20cd   :  { %v1507_v20 = vmul.f32 %v1505_v53, %v1499_v54 }
0x20cf   :  { %1509 = vrot.lane.b32.xlu2 %v1507_v20, %s2091_s24 }
0x2129   :  { %v1510_v0 = vpop.permute.xlu2 %1509 }
0x212a   :  { %v1512_v57 = vadd.f32 %v1510_v0, %v1502_v25 }
0x212c   :  { %1934 = vtanh.f32 %v1512_v57 }
0x2132   :  { %v1935_v6 = vpop.eup %1934 }
0x2133   :  { %1515 = vrot.lane.b32.xlu0 %v1935_v6, %s2090_s21 }
0x21a5   :  { %v1516_v59 = vpop.permute.xlu0 %1515 }
0x21a6   :  { %v1518_v62 = vmul.f32 %v1516_v59, %v1499_v54 }
0x21a8   :  { %1540 = vrot.lane.b32.xlu1 %v1518_v62, %s2091_s24 }
0x221a   :  { %v1541_v63 = vpop.permute.xlu1 %1540 }
0x221b   :  { %1670 = vst.msk [vmem:[#allocation8] sm:$0xf] %vm1669_vm6, %v1541_v63  ;;  %1794 = vmatmul.msk.f32.vlgmr.msrb.gmra.mxu2 %vm144_vm1, %v1541_v63 }
0x229e   :  { %v1561_v1 = vpop.f32.mrf.mxu2 }
0x229f   :  { %v1562_v61 = vadd.f32 %v1561_v1, %v1536_v3 }
0x22a1   :  { %v1564_v7 = vadd.f32 %v2571_v15, %v1562_v61 }
0x22a3   :  { %1936 = vtanh.f32 %v1564_v7  ;;  %v1795_v9 = vmul.f32 -1.442695, %v1564_v7 }
0x22a5   :  { %1938 = vpow2.f32 %v1795_v9 }
0x22a9   :  { %v1937_v8 = vpop.eup %1936 }
0x22aa   :  { %1587 = vrot.lane.b32.xlu2 %v1937_v8, %s2090_s21 }
0x22ab   :  { %v1939_v10 = vpop.eup %1938 }
0x22ac   :  { %v1568_v17 = vadd.f32 1.0, %v1939_v10 }
0x22ae   :  { %1940 = vrcp.f32 %v1568_v17  ;;  %v1580_v5 = vand.u32 2147483648, %v1568_v17  ;;  %vm1574_vm8 = vweird.f32 %v1568_v17  ;;  %v1578_v22 = vand.u32 2147483647, %v1568_v17 }
0x22b0   :  { %v1581_v48 = vor.u32 1.1754944e-38, %v1580_v5  ;;  %vm1579_vm10 = vcmp.eq.f32.partialorder %v1578_v22, 8.507059e+37 }
0x22b4   :  { %v1941_v55 = vpop.eup %1940 }
0x22b5   :  { %v1570_v19 = vmul.f32 %v1941_v55, %v1568_v17  ;;  %vm1575_vm7 = vweird.f32 %v1941_v55 }
0x22b6   :  { %vm1576_vm9 = vmor %vm1574_vm8, %vm1575_vm7 }
0x22b7   :  { %v1571_v47 = vsub.f32 1.0, %v1570_v19 }
0x22b9   :  { %v1572_v21 = vmul.f32 %v1941_v55, %v1571_v47 }
0x22bb   :  { %v1573_v2 = vadd.f32 %v1941_v55, %v1572_v21 }
0x22bd   :  { %v1577_v15 = vsel %vm1576_vm9, %v1941_v55, %v1573_v2 }
0x22be   :  { %v1582_v24 = vsel %vm1579_vm10, %v1581_v48, %v1577_v15 }
0x22bf   :  { %v1585_v39 = vmul.f32 %v1582_v24, %v2615_v40 }
0x2304   :  { %v1588_v23 = vpop.permute.xlu2 %1587 }
0x2305   :  { %v1590_v26 = vmul.f32 %v1588_v23, %v1582_v24 }
0x2307   :  { %1592 = vrot.lane.b32.xlu0 %v1590_v26, %s2091_s24 }
0x230f   :  { %1628 = vrot.lane.b32.xlu0 %v509_v37, %s2092_s3 }
0x2317   :  { %1640 = vrot.lane.b32.xlu0 %v1067_v36, %s2090_s21 }
0x2379   :  { %v1593_v38 = vpop.permute.xlu0 %1592 }
0x237a   :  { %v1595_v27 = vadd.f32 %v1593_v38, %v1585_v39 }
0x237c   :  { %1942 = vtanh.f32 %v1595_v27 }
0x2381   :  { %v1629_v11 = vpop.permute.xlu0 %1628 }
0x2382   :  { %v1943_v32 = vpop.eup %1942  ;;  %v1655_v56 = vsel %vm120_vm0, %v323_v28, %v1629_v11  ;;  %vm1665_vm0 = vcmask 916480  }
0x2383   :  { %1598 = vrot.lane.b32.xlu1 %v1943_v32, %s2090_s21 }
0x2389   :  { %v1641_v30 = vpop.permute.xlu0 %1640 }
0x238b   :  { %1632 = vrot.lane.b32.xlu1 %v695_v34, %s2091_s24 }
0x2393   :  { %1644 = vrot.lane.b32.xlu1 %v1253_v58, %s2093_s9 }
0x239b   :  { %1672 = vrot.lane.b32.xlu1 %v1512_v57, %s2094_s22 }
0x23f5   :  { %v1599_v51 = vpop.permute.xlu1 %1598 }
0x23f6   :  { %v1601_v40 = vmul.f32 %v1599_v51, %v1582_v24 }
0x23f8   :  { %1603 = vrot.lane.b32.xlu2 %v1601_v40, %s2091_s24  ;;  %s2096_s24 = smov [#allocation8]  }
0x23f9   :  { %s1700_s4 = sshll.u32 %s2096_s24, 4  ;;  %s1701_s4 = int_to_ptr.vmem [resolvable:$true] %s1700_s4 }
0x23fd   :  { %v1633_v42 = vpop.permute.xlu1 %1632 }
0x23fe   :  { %v1656_v41 = vsel %vm144_vm1, %v1655_v56, %v1633_v42 }
0x2400   :  { %1636 = vrot.lane.b32.xlu2 %v881_v16, %s2095_s23 }
0x2405   :  { %v1645_v13 = vpop.permute.xlu1 %1644 }
0x2408   :  { %1648 = vrot.lane.b32.xlu2 %v1439_v44, %s2094_s22 }
0x240d   :  { %v1673_v60 = vpop.permute.xlu1 %1672 }
0x240e   :  { %1675 = vst.msk [vmem:[#allocation10] sm:$0xf] %vm1669_vm6, %v1673_v60 }
0x2410   :  { %1680 = vrot.lane.b32.xlu2 %v1595_v27, %s2094_s22 }
0x2452   :  { %v1604_v4 = vpop.permute.xlu2 %1603 }
0x2453   :  { %1678 = vst.msk [vmem:[#allocation8 + $0x4] sm:$0xf] %vm1669_vm6, %v1604_v4  ;;  %1796 = vmatmul.msk.f32.vlgmr.msrb.gmra.mxu3 %vm144_vm1, %v1604_v4 }
0x2454   :  { %1708 = dma.vmem_to_hbm [thread:$0]  %s1701_s4, 128, %s1703_s26, [#allocation9], %s2090_s21, %s2090_s21, %s2097_s2  }
0x245a   :  { %v1637_v29 = vpop.permute.xlu2 %1636 }
0x245b   :  { %v1658_v45 = vsel %vm1657_vm11, %v1656_v41, %v1637_v29 }
0x245c   :  { %v1660_v14 = vsel %vm1659_vm12, %v1658_v45, %v1641_v30 }
0x245d   :  { %v1662_v46 = vsel %vm1661_vm13, %v1660_v14, %v1645_v13 }
0x2462   :  { %v1649_v31 = vpop.permute.xlu2 %1648 }
0x2463   :  { %v1664_v49 = vsel %vm1663_vm14, %v1662_v46, %v1649_v31 }
0x246a   :  { %v1681_v12 = vpop.permute.xlu2 %1680 }
0x246b   :  { %1684 = vst.msk [vmem:[#allocation10 + $0x4] sm:$0xf] %vm1669_vm6, %v1681_v12 }
0x246c   :  { %1721 = dma.vmem_to_hbm [thread:$0]  %s1714_s13, 128, %s1716_s29, [#allocation9], %s2090_s21, %s2090_s21, %s2097_s2  }
0x24d6   :  { %v1624_v33 = vpop.f32.mrf.mxu3 }
0x24d7   :  { %v1625_v18 = vadd.f32 %v2637_v35, %v1624_v33 }
0x24d9   :  { %1652 = vrot.lane.b32.xlu0 %v1625_v18, %s2099_s11 }
0x254b   :  { %v1653_v50 = vpop.permute.xlu0 %1652 }
0x254c   :  { %v1666_v52 = vsel %vm1665_vm0, %v1664_v49, %v1653_v50 }
0x254d   :  { %1667 = vst [vmem:[#allocation7] sm:$0xf] %v1666_v52 }
0x254e   :  { %1695 = dma.vmem_to_hbm [thread:$0]  %s1691_s5, 64, %s1693_s8, [#allocation4]  }
0x254f   :  { %2082 = dma.done.wait [#allocation4], 64  }
0x2550   :  { %2083 = vsyncadd [#allocation4], 4294967232 }
0x2551   :  { %2084 = dma.done.wait [#allocation9], 256  }
0x2552   :  { %2085 = vsyncadd [#allocation9], 4294967040 }
0x2553   :  { %1734 = vsyncpa [#allocation3], 1 }
0x2554   :  { %1735 = vsyncpa [#allocation6], 1 }
0x2555   :  { %1736 = vsyncpa [#allocation4], 1 }
0x2556   :  { %1737 = vsyncpa [#allocation9], 1 }

</bundles_post_ra>
